<compile_context>
chip_gen: v6e
topology: v6e:2x2x1
jax: 0.10.0
libtpu: 0.0.40
codegen_flags: <defaults>
</compile_context>

<pallas_src>
import functools

import jax
import jax.numpy as jnp
import numpy as np
from jax import lax
from jax.experimental import pallas as pl
from jax.experimental.pallas import tpu as pltpu

EPS = 1e-5          # torch.nn.LayerNorm default eps
NEG_BIG = -1e30     # fill for padded classifier logits (vanishes under log-sum-exp)


def _layer_norm(x, gamma, beta):
    mu = jnp.mean(x, axis=-1, keepdims=True)
    var = jnp.mean((x - mu) ** 2, axis=-1, keepdims=True)
    return (x - mu) * lax.rsqrt(var + EPS) * gamma + beta


# -----------------------------------------------------------------------------
# Fused kernel: grid = (depth,); activation carried in VMEM scratch across depth.
# -----------------------------------------------------------------------------
def fused_kernel(x_ref, wqkv_ref, wo_ref, w1_ref, w2_ref, small_ref, bb1_ref,
                 wcls_ref, bcls_ref, o_ref, x_scr, ctx_scr,
                 *, B, T, heads, max_pool):
    d = pl.program_id(0)
    last = pl.num_programs(0) - 1
    E = x_scr.shape[1]
    hd = E // heads
    scale = 1.0 / float(hd) ** 0.5

    @pl.when(d == 0)
    def _():
        x_scr[...] = x_ref[...]                       # (B*T, E) f32, loaded once

    x = x_scr[...]                                    # (B*T, E) f32

    wqkv = wqkv_ref[0]                                # (E, 3E) bf16
    wo = wo_ref[0]                                    # (E, E)  bf16
    w1 = w1_ref[0]                                    # (E, F)  bf16
    w2 = w2_ref[0]                                    # (F, E)  bf16
    sp = small_ref[0]                                 # (8, E)  f32 packed small params
    bo, g1, be1 = sp[0:1, :], sp[1:2, :], sp[2:3, :]
    bb2, g2, be2 = sp[3:4, :], sp[4:5, :], sp[5:6, :]
    bb1 = bb1_ref[0]                                  # (1, F)  f32

    # Fused QKV projection with M = B*T rows, f32 accumulation.
    qkv = jnp.dot(x.astype(wqkv.dtype), wqkv, preferred_element_type=jnp.float32)
    q = qkv[:, :E] * scale            # fold 1/sqrt(hd) into q: O(B*T*E), not O(B*T*T)
    k = qkv[:, E:2 * E]
    v = qkv[:, 2 * E:]

    # Per-head attention (static unroll over heads); ctx written column-wise into
    # a VMEM scratch so the output projection below is a single full-K matmul.
    for h in range(heads):
        sl = slice(h * hd, (h + 1) * hd)
        qh = q[:, sl].reshape(B, T, hd)
        kh = k[:, sl].reshape(B, T, hd)
        vh = v[:, sl].reshape(B, T, hd)
        s = jnp.einsum("bqd,bkd->bqk", qh, kh,
                       preferred_element_type=jnp.float32)          # (B, T, T)
        s = s - jnp.max(s, axis=-1, keepdims=True)
        p = jnp.exp(s)
        p = p * pl.reciprocal(jnp.sum(p, axis=-1, keepdims=True), approx=True)
        ctxh = jnp.einsum("bqk,bkd->bqd", p, vh,
                          preferred_element_type=jnp.float32)        # (B, T, hd)
        ctx_scr[:, sl] = ctxh.reshape(B * T, hd)

    # Single full-K output projection (no K=hd matmuls, no concatenate).
    attn = jnp.dot(ctx_scr[...].astype(wo.dtype), wo,
                   preferred_element_type=jnp.float32) + bo

    x1 = _layer_norm(attn + x, g1, be1)                               # residual + LN1
    h1 = jnp.maximum(jnp.dot(x1.astype(w1.dtype), w1,
                             preferred_element_type=jnp.float32) + bb1, 0.0)
    f = jnp.dot(h1.astype(w2.dtype), w2, preferred_element_type=jnp.float32) + bb2
    x_new = _layer_norm(f + x1, g2, be2)                              # residual + LN2

    @pl.when(d < last)
    def _():
        x_scr[...] = x_new          # skip the redundant store on the final layer

    @pl.when(d == last)
    def _():
        if max_pool:
            pooled = jnp.concatenate(
                [jnp.max(x_new[b * T:(b + 1) * T, :], axis=0, keepdims=True)
                 for b in range(B)], axis=0)                          # (B, E)
        else:
            pooled = jnp.concatenate(
                [jnp.mean(x_new[b * T:(b + 1) * T, :], axis=0, keepdims=True)
                 for b in range(B)], axis=0)
        wcls = wcls_ref[...]
        logits = jnp.dot(pooled.astype(wcls.dtype), wcls,
                         preferred_element_type=jnp.float32) + bcls_ref[...]
        m = jnp.max(logits, axis=-1, keepdims=True)
        z = logits - m
        lse = jnp.log(jnp.sum(jnp.exp(z), axis=-1, keepdims=True))
        o_ref[...] = z - lse                                          # (B, Cpad) f32


# -----------------------------------------------------------------------------
# Parameter packing: stack per-layer weights, cast matmul weights to bf16,
# coalesce the tiny per-layer vectors, pad the classifier to a lane-dense dim.
# -----------------------------------------------------------------------------
def _prepare(params):
    blocks = params["blocks"]
    st = lambda name: jnp.stack([blk[name] for blk in blocks], axis=0)

    wo = st("wo")
    D, E, _ = wo.shape
    zeros = jnp.zeros((D, E), jnp.float32)
    prep = {
        "wqkv": jnp.concatenate([st("wq"), st("wk"), st("wv")],
                                axis=-1).astype(jnp.bfloat16),   # (D, E, 3E)
        "wo": wo.astype(jnp.bfloat16),                           # (D, E, E)
        "w1": st("w1").astype(jnp.bfloat16),                     # (D, E, F)
        "w2": st("w2").astype(jnp.bfloat16),                     # (D, F, E)
        # packed small params, rows: 0=bo 1=g1 2=be1 3=bb2 4=g2 5=be2 (+2 pad rows)
        "small": jnp.stack([st("bo"), st("g1"), st("be1"),
                            st("bb2"), st("g2"), st("be2"),
                            zeros, zeros], axis=1).astype(jnp.float32),  # (D, 8, E)
        "bb1": st("bb1")[:, None, :].astype(jnp.float32),        # (D, 1, F)
    }
    E_, C = params["w_out"].shape
    c_pad = ((C + 127) // 128) * 128
    prep["w_cls"] = (jnp.zeros((E_, c_pad), jnp.float32)
                     .at[:, :C].set(params["w_out"]).astype(jnp.bfloat16))
    prep["b_cls"] = (jnp.full((1, c_pad), NEG_BIG, jnp.float32)
                     .at[0, :C].set(params["b_out"]))
    return prep


def _vmem_limit_bytes(E, F, BT, T, c_pad):
    """Rough VMEM footprint estimate, clamped so it is safe on v5e/v6e/v7x."""
    bf16, f32 = 2, 4
    layer_w = (3 * E * E + E * E + E * F + F * E) * bf16 + (8 * E + F) * f32
    fixed = BT * E * f32 + E * c_pad * bf16 + c_pad * f32 + BT * c_pad * f32
    scratch = 2 * BT * E * f32
    temps = BT * (3 * E + 2 * E + 2 * F) * f32 + BT * T * f32
    est = 2 * layer_w + 2 * fixed + scratch + 2 * temps + (4 << 20)
    return int(max(16 << 20, min(est, 48 << 20)))


def forward(params, token_ids, *, heads, max_pool=True):
    B, T = token_ids.shape
    E = params["tok_emb"].shape[1]
    C = params["w_out"].shape[1]
    assert E % heads == 0

    prep = _prepare(params)
    depth = prep["wqkv"].shape[0]
    F_ff = prep["w1"].shape[2]
    c_pad = prep["w_cls"].shape[1]

    # TODO(synk): embedding gather (nn.Embedding) stays in plain JAX; dropout p=0.0 is identity.
    x = (jnp.take(params["tok_emb"], token_ids, axis=0)
         + params["pos_emb"][:T][None]).astype(jnp.float32).reshape(B * T, E)

    per_layer = lambda d: (d, 0, 0)     # streamed (double-buffered) over depth
    inv2 = lambda d: (0, 0)             # grid-invariant: fetched once

    in_specs = [
        pl.BlockSpec((B * T, E), inv2),                  # x (loaded once)
        pl.BlockSpec((1, E, 3 * E), per_layer),          # wqkv
        pl.BlockSpec((1, E, E), per_layer),              # wo
        pl.BlockSpec((1, E, F_ff), per_layer),           # ff w1
        pl.BlockSpec((1, F_ff, E), per_layer),           # ff w2
        pl.BlockSpec((1, 8, E), per_layer),              # packed bo/g1/be1/bb2/g2/be2
        pl.BlockSpec((1, 1, F_ff), per_layer),           # ff b1
        pl.BlockSpec((E, c_pad), inv2),                  # classifier W (padded)
        pl.BlockSpec((1, c_pad), inv2),                  # classifier b (padded, -1e30)
    ]
    out_spec = pl.BlockSpec((B, c_pad), inv2)

    out = pl.pallas_call(
        functools.partial(fused_kernel, B=B, T=T, heads=heads, max_pool=max_pool),
        out_shape=jax.ShapeDtypeStruct((B, c_pad), jnp.float32),
        grid=(depth,),
        in_specs=in_specs,
        out_specs=out_spec,
        scratch_shapes=[pltpu.VMEM((B * T, E), jnp.float32),   # activation carry
                        pltpu.VMEM((B * T, E), jnp.float32)],  # per-layer attn ctx
        compiler_params=pltpu.CompilerParams(
            dimension_semantics=("arbitrary",),
            vmem_limit_bytes=_vmem_limit_bytes(E, F_ff, B * T, T, c_pad)),
    )(x, prep["wqkv"], prep["wo"], prep["w1"], prep["w2"],
      prep["small"], prep["bb1"], prep["w_cls"], prep["b_cls"])

    return out[:, :C]                                    # drop lane padding


# -----------------------------------------------------------------------------
# Pure-JAX reference (same bf16 weights & f32 accumulation; exact reciprocal).
# -----------------------------------------------------------------------------
def _block_ref(x, wqkv, wo, bo, g1, be1, w1, bb1, w2, bb2, g2, be2, *, B, T, heads):
    BT, E = x.shape
    hd = E // heads
    scale = 1.0 / float(hd) ** 0.5
    qkv = jnp.dot(x.astype(wqkv.dtype), wqkv, preferred_element_type=jnp.float32)
    q = (qkv[:, :E] * scale).reshape(B, T, heads, hd)
    k = qkv[:, E:2 * E].reshape(B, T, heads, hd)
    v = qkv[:, 2 * E:].reshape(B, T, heads, hd)
    s = jnp.einsum("bqhd,bkhd->bhqk", q, k, preferred_element_type=jnp.float32)
    s = s - jnp.max(s, axis=-1, keepdims=True)
    p = jnp.exp(s)
    p = p / jnp.sum(p, axis=-1, keepdims=True)
    ctx = jnp.einsum("bhqk,bkhd->bqhd", p, v,
                     preferred_element_type=jnp.float32).reshape(BT, E)
    attn = jnp.dot(ctx.astype(wo.dtype), wo, preferred_element_type=jnp.float32) + bo
    x1 = _layer_norm(attn + x, g1, be1)
    h1 = jnp.maximum(jnp.dot(x1.astype(w1.dtype), w1,
                             preferred_element_type=jnp.float32) + bb1, 0.0)
    f = jnp.dot(h1.astype(w2.dtype), w2, preferred_element_type=jnp.float32) + bb2
    return _layer_norm(f + x1, g2, be2)


def forward_ref(params, token_ids, *, heads, max_pool=True):
    B, T = token_ids.shape
    E = params["tok_emb"].shape[1]
    C = params["w_out"].shape[1]
    prep = _prepare(params)
    depth = prep["wqkv"].shape[0]

    x = (jnp.take(params["tok_emb"], token_ids, axis=0)
         + params["pos_emb"][:T][None]).astype(jnp.float32).reshape(B * T, E)
    for d in range(depth):
        sp = prep["small"][d]
        x = _block_ref(x, prep["wqkv"][d], prep["wo"][d],
                       sp[0:1, :], sp[1:2, :], sp[2:3, :],
                       prep["w1"][d], prep["bb1"][d], prep["w2"][d],
                       sp[3:4, :], sp[4:5, :], sp[5:6, :],
                       B=B, T=T, heads=heads)
    xb = x.reshape(B, T, E)
    pooled = jnp.max(xb, axis=1) if max_pool else jnp.mean(xb, axis=1)
    logits = jnp.dot(pooled.astype(prep["w_cls"].dtype), prep["w_cls"],
                     preferred_element_type=jnp.float32) + prep["b_cls"]
    m = jnp.max(logits, axis=-1, keepdims=True)
    z = logits - m
    lse = jnp.log(jnp.sum(jnp.exp(z), axis=-1, keepdims=True))
    return (z - lse)[:, :C]


# -----------------------------------------------------------------------------
# Parameters
# -----------------------------------------------------------------------------
def init_params(key, *, n_seq, dim_emb, num_tokens, num_classes, depth, ff_mult=4):
    keys = iter(jax.random.split(key, 3 + 6 * depth))
    nk = lambda: next(keys)
    std = 0.02
    F = ff_mult * dim_emb
    params = {
        "tok_emb": jax.random.normal(nk(), (num_tokens, dim_emb), jnp.float32) * std,
        "pos_emb": jax.random.normal(nk(), (n_seq, dim_emb), jnp.float32) * std,
        "w_out": jax.random.normal(nk(), (dim_emb, num_classes), jnp.float32) * std,
        "b_out": jnp.zeros((num_classes,), jnp.float32),
        "blocks": [],
    }
    for _ in range(depth):
        params["blocks"].append({
            "wq": jax.random.normal(nk(), (dim_emb, dim_emb), jnp.float32) * std,
            "wk": jax.random.normal(nk(), (dim_emb, dim_emb), jnp.float32) * std,
            "wv": jax.random.normal(nk(), (dim_emb, dim_emb), jnp.float32) * std,
            "wo": jax.random.normal(nk(), (dim_emb, dim_emb), jnp.float32) * std,
            "bo": jnp.zeros((dim_emb,), jnp.float32),
            "g1": jnp.ones((dim_emb,), jnp.float32),
            "be1": jnp.zeros((dim_emb,), jnp.float32),
            "w1": jax.random.normal(nk(), (dim_emb, F), jnp.float32) * std,
            "bb1": jnp.zeros((F,), jnp.float32),
            "w2": jax.random.normal(nk(), (F, dim_emb), jnp.float32) * std,
            "bb2": jnp.zeros((dim_emb,), jnp.float32),
            "g2": jnp.ones((dim_emb,), jnp.float32),
            "be2": jnp.zeros((dim_emb,), jnp.float32),
        })
    return params


if __name__ == "__main__":
    # Small config consistent with the module's forward.
    B, n_seq, dim_emb, num_tokens, num_classes = 2, 8, 32, 50, 4
    heads, depth = 4, 2

    key = jax.random.PRNGKey(0)
    pkey, xkey = jax.random.split(key)
    params = init_params(pkey, n_seq=n_seq, dim_emb=dim_emb, num_tokens=num_tokens,
                         num_classes=num_classes, depth=depth)
    tokens = jax.random.randint(xkey, (B, n_seq), 0, num_tokens, dtype=jnp.int32)

    out = jax.block_until_ready(forward(params, tokens, heads=heads, max_pool=True))
    ref = jax.block_until_ready(forward_ref(params, tokens, heads=heads, max_pool=True))

    # Tolerance accounts for the approx (EUP) softmax reciprocal (error compounds
    # per layer; fine at depth=2). bf16 weight casts are identical on both sides,
    # accumulation is f32 everywhere.
    np.testing.assert_allclose(np.asarray(out), np.asarray(ref), rtol=2e-3, atol=2e-3)

    assert out.shape == (B, num_classes) and out.dtype == jnp.float32
    print("KERNEL_OK")
</pallas_src>

<mosaic_0001>
module attributes {stable_mosaic.version = 11 : i64} {
  func.func @fused_kernel(%arg0: i32, %arg1: memref<16x32xf32, #tpu.memory_space<vmem>>, %arg2: memref<1x32x96xbf16, #tpu.memory_space<vmem>>, %arg3: memref<1x32x32xbf16, #tpu.memory_space<vmem>>, %arg4: memref<1x32x128xbf16, #tpu.memory_space<vmem>>, %arg5: memref<1x128x32xbf16, #tpu.memory_space<vmem>>, %arg6: memref<1x8x32xf32, #tpu.memory_space<vmem>>, %arg7: memref<1x1x128xf32, #tpu.memory_space<vmem>>, %arg8: memref<32x128xbf16, #tpu.memory_space<vmem>>, %arg9: memref<1x128xf32, #tpu.memory_space<vmem>>, %arg10: memref<2x128xf32, #tpu.memory_space<vmem>>, %arg11: memref<16x32xf32, #tpu.memory_space<vmem>>, %arg12: memref<16x32xf32, #tpu.memory_space<vmem>>) attributes {dimension_semantics = [#tpu.dimension_semantics<arbitrary>], iteration_bounds = array<i64: 2>, scalar_prefetch = 0 : i64, scratch_operands = 2 : i64, tpu.core_type = #tpu.core_type<tc>, window_params = [{pipeline_mode = #tpu.pipeline_mode<synchronous>, transform_indices = @transform_0, window_bounds = array<i64: 16, 32>}, {transform_indices = @transform_1, window_bounds = array<i64: 1, 32, 96>}, {transform_indices = @transform_2, window_bounds = array<i64: 1, 32, 32>}, {transform_indices = @transform_3, window_bounds = array<i64: 1, 32, 128>}, {transform_indices = @transform_4, window_bounds = array<i64: 1, 128, 32>}, {transform_indices = @transform_5, window_bounds = array<i64: 1, 8, 32>}, {transform_indices = @transform_6, window_bounds = array<i64: 1, 1, 128>}, {pipeline_mode = #tpu.pipeline_mode<synchronous>, transform_indices = @transform_7, window_bounds = array<i64: 32, 128>}, {pipeline_mode = #tpu.pipeline_mode<synchronous>, transform_indices = @transform_8, window_bounds = array<i64: 1, 128>}, {pipeline_mode = #tpu.pipeline_mode<synchronous>, transform_indices = @transform_9, window_bounds = array<i64: 2, 128>}]} {
    %c0_i32 = arith.constant 0 : i32
    %0 = arith.cmpi eq, %arg0, %c0_i32 : i32
    %1 = arith.extui %0 : i1 to i32
    %c0_i32_0 = arith.constant 0 : i32
    %2 = arith.cmpi ne, %1, %c0_i32_0 : i32
    scf.if %2 {
      %c0_61 = arith.constant 0 : index
      %c0_62 = arith.constant 0 : index
      %176 = vector.load %arg1[%c0_61, %c0_62] : memref<16x32xf32, #tpu.memory_space<vmem>>, vector<16x32xf32>
      %c0_63 = arith.constant 0 : index
      %c0_64 = arith.constant 0 : index
      %177 = vector.load %arg11[%c0_63, %c0_64] : memref<16x32xf32, #tpu.memory_space<vmem>>, vector<16x32xf32>
      tpu.vector_store %arg11[%c0_63, %c0_64], %176 {strides = array<i32>} : memref<16x32xf32, #tpu.memory_space<vmem>>, vector<16x32xf32>,
    } else {
    }
    %c0 = arith.constant 0 : index
    %c0_1 = arith.constant 0 : index
    %3 = vector.load %arg11[%c0, %c0_1] : memref<16x32xf32, #tpu.memory_space<vmem>>, vector<16x32xf32>
    %c0_2 = arith.constant 0 : index
    %c0_3 = arith.constant 0 : index
    %c0_4 = arith.constant 0 : index
    %4 = vector.load %arg2[%c0_2, %c0_3, %c0_4] : memref<1x32x96xbf16, #tpu.memory_space<vmem>>, vector<1x32x96xbf16>
    %5 = vector.shape_cast %4 : vector<1x32x96xbf16> to vector<32x96xbf16>
    %c0_5 = arith.constant 0 : index
    %c0_6 = arith.constant 0 : index
    %c0_7 = arith.constant 0 : index
    %6 = vector.load %arg3[%c0_5, %c0_6, %c0_7] : memref<1x32x32xbf16, #tpu.memory_space<vmem>>, vector<1x32x32xbf16>
    %7 = vector.shape_cast %6 : vector<1x32x32xbf16> to vector<32x32xbf16>
    %c0_8 = arith.constant 0 : index
    %c0_9 = arith.constant 0 : index
    %c0_10 = arith.constant 0 : index
    %8 = vector.load %arg4[%c0_8, %c0_9, %c0_10] : memref<1x32x128xbf16, #tpu.memory_space<vmem>>, vector<1x32x128xbf16>
    %9 = vector.shape_cast %8 : vector<1x32x128xbf16> to vector<32x128xbf16>
    %c0_11 = arith.constant 0 : index
    %c0_12 = arith.constant 0 : index
    %c0_13 = arith.constant 0 : index
    %10 = vector.load %arg5[%c0_11, %c0_12, %c0_13] : memref<1x128x32xbf16, #tpu.memory_space<vmem>>, vector<1x128x32xbf16>
    %11 = vector.shape_cast %10 : vector<1x128x32xbf16> to vector<128x32xbf16>
    %c0_14 = arith.constant 0 : index
    %c0_15 = arith.constant 0 : index
    %c0_16 = arith.constant 0 : index
    %12 = vector.load %arg6[%c0_14, %c0_15, %c0_16] : memref<1x8x32xf32, #tpu.memory_space<vmem>>, vector<1x8x32xf32>
    %13 = vector.shape_cast %12 : vector<1x8x32xf32> to vector<8x32xf32>
    %14 = vector.extract_strided_slice %13 {offsets = [0, 0], sizes = [1, 32], strides = [1, 1]} : vector<8x32xf32> to vector<1x32xf32>
    %15 = vector.extract_strided_slice %13 {offsets = [1, 0], sizes = [1, 32], strides = [1, 1]} : vector<8x32xf32> to vector<1x32xf32>
    %16 = vector.extract_strided_slice %13 {offsets = [2, 0], sizes = [1, 32], strides = [1, 1]} : vector<8x32xf32> to vector<1x32xf32>
    %17 = vector.extract_strided_slice %13 {offsets = [3, 0], sizes = [1, 32], strides = [1, 1]} : vector<8x32xf32> to vector<1x32xf32>
    %18 = vector.extract_strided_slice %13 {offsets = [4, 0], sizes = [1, 32], strides = [1, 1]} : vector<8x32xf32> to vector<1x32xf32>
    %19 = vector.extract_strided_slice %13 {offsets = [5, 0], sizes = [1, 32], strides = [1, 1]} : vector<8x32xf32> to vector<1x32xf32>
    %c0_17 = arith.constant 0 : index
    %c0_18 = arith.constant 0 : index
    %c0_19 = arith.constant 0 : index
    %20 = vector.load %arg7[%c0_17, %c0_18, %c0_19] : memref<1x1x128xf32, #tpu.memory_space<vmem>>, vector<1x1x128xf32>
    %21 = vector.shape_cast %20 : vector<1x1x128xf32> to vector<1x128xf32>
    %22 = arith.truncf %3 : vector<16x32xf32> to vector<16x32xbf16>
    %cst = arith.constant dense<0.000000e+00> : vector<16x96xf32>
    %23 = tpu.matmul %22, %5, %cst {dimension_numbers = #tpu.dot_dimension_numbers<[1], [0], [0], [1], [0, 0, 1, 1], [], []>} : vector<16x32xbf16>, vector<32x96xbf16>, vector<16x96xf32> -> vector<16x96xf32>
    %24 = vector.extract_strided_slice %23 {offsets = [0, 0], sizes = [16, 32], strides = [1, 1]} : vector<16x96xf32> to vector<16x32xf32>
    %cst_20 = arith.constant 0.353553385 : f32
    %25 = vector.broadcast %cst_20 : f32 to vector<16x32xf32>
    %26 = arith.mulf %24, %25 : vector<16x32xf32>
    %27 = vector.extract_strided_slice %23 {offsets = [0, 32], sizes = [16, 32], strides = [1, 1]} : vector<16x96xf32> to vector<16x32xf32>
    %28 = vector.extract_strided_slice %23 {offsets = [0, 64], sizes = [16, 32], strides = [1, 1]} : vector<16x96xf32> to vector<16x32xf32>
    %29 = vector.extract_strided_slice %26 {offsets = [0, 0], sizes = [16, 8], strides = [1, 1]} : vector<16x32xf32> to vector<16x8xf32>
    %30 = vector.shape_cast %29 : vector<16x8xf32> to vector<2x8x8xf32>
    %31 = vector.extract_strided_slice %27 {offsets = [0, 0], sizes = [16, 8], strides = [1, 1]} : vector<16x32xf32> to vector<16x8xf32>
    %32 = vector.shape_cast %31 : vector<16x8xf32> to vector<2x8x8xf32>
    %33 = vector.extract_strided_slice %28 {offsets = [0, 0], sizes = [16, 8], strides = [1, 1]} : vector<16x32xf32> to vector<16x8xf32>
    %34 = vector.shape_cast %33 : vector<16x8xf32> to vector<2x8x8xf32>
    "tpu.trace_start"() <{level = 10 : i32, message = "bqd,bkd->bqk"}> : () -> ()
    %cst_21 = arith.constant dense<0.000000e+00> : vector<2x8x8xf32>
    %35 = tpu.matmul %30, %32, %cst_21 {dimension_numbers = #tpu.dot_dimension_numbers<[2], [2], [1], [1], [0, 0, 0, 1, 1, 1], [0], [0]>} : vector<2x8x8xf32>, vector<2x8x8xf32>, vector<2x8x8xf32> -> vector<2x8x8xf32>
    "tpu.trace_stop"() : () -> ()
    %cst_22 = arith.constant dense<0xFF800000> : vector<2x8xf32>
    %36 = vector.multi_reduction <maximumf>, %35, %cst_22 [2] : vector<2x8x8xf32> to vector<2x8xf32>
    %37 = vector.shape_cast %36 : vector<2x8xf32> to vector<2x8x1xf32>
    %38 = vector.broadcast %37 : vector<2x8x1xf32> to vector<2x8x8xf32>
    %39 = arith.subf %35, %38 : vector<2x8x8xf32>
    %40 = math.exp %39 : vector<2x8x8xf32>
    %cst_23 = arith.constant dense<0.000000e+00> : vector<2x8xf32>
    %41 = vector.multi_reduction <add>, %40, %cst_23 [2] : vector<2x8x8xf32> to vector<2x8xf32>
    %42 = vector.shape_cast %41 : vector<2x8xf32> to vector<2x8x1xf32>
    %43 = tpu.reciprocal %42 {approx = true} : vector<2x8x1xf32> -> vector<2x8x1xf32>
    %44 = vector.broadcast %43 : vector<2x8x1xf32> to vector<2x8x8xf32>
    %45 = arith.mulf %40, %44 : vector<2x8x8xf32>
    "tpu.trace_start"() <{level = 10 : i32, message = "bqk,bkd->bqd"}> : () -> ()
    %cst_24 = arith.constant dense<0.000000e+00> : vector<2x8x8xf32>
    %46 = tpu.matmul %45, %34, %cst_24 {dimension_numbers = #tpu.dot_dimension_numbers<[2], [1], [1], [2], [0, 0, 0, 1, 1, 2], [0], [0]>} : vector<2x8x8xf32>, vector<2x8x8xf32>, vector<2x8x8xf32> -> vector<2x8x8xf32>
    "tpu.trace_stop"() : () -> ()
    %47 = vector.shape_cast %46 : vector<2x8x8xf32> to vector<16x8xf32>
    %c0_25 = arith.constant 0 : index
    %c0_26 = arith.constant 0 : index
    %48 = vector.load %arg12[%c0_25, %c0_26] : memref<16x32xf32, #tpu.memory_space<vmem>>, vector<16x8xf32>
    tpu.vector_store %arg12[%c0_25, %c0_26], %47 {strides = array<i32>} : memref<16x32xf32, #tpu.memory_space<vmem>>, vector<16x8xf32>,
    %49 = vector.extract_strided_slice %26 {offsets = [0, 8], sizes = [16, 8], strides = [1, 1]} : vector<16x32xf32> to vector<16x8xf32>
    %50 = vector.shape_cast %49 : vector<16x8xf32> to vector<2x8x8xf32>
    %51 = vector.extract_strided_slice %27 {offsets = [0, 8], sizes = [16, 8], strides = [1, 1]} : vector<16x32xf32> to vector<16x8xf32>
    %52 = vector.shape_cast %51 : vector<16x8xf32> to vector<2x8x8xf32>
    %53 = vector.extract_strided_slice %28 {offsets = [0, 8], sizes = [16, 8], strides = [1, 1]} : vector<16x32xf32> to vector<16x8xf32>
    %54 = vector.shape_cast %53 : vector<16x8xf32> to vector<2x8x8xf32>
    "tpu.trace_start"() <{level = 10 : i32, message = "bqd,bkd->bqk"}> : () -> ()
    %cst_27 = arith.constant dense<0.000000e+00> : vector<2x8x8xf32>
    %55 = tpu.matmul %50, %52, %cst_27 {dimension_numbers = #tpu.dot_dimension_numbers<[2], [2], [1], [1], [0, 0, 0, 1, 1, 1], [0], [0]>} : vector<2x8x8xf32>, vector<2x8x8xf32>, vector<2x8x8xf32> -> vector<2x8x8xf32>
    "tpu.trace_stop"() : () -> ()
    %cst_28 = arith.constant dense<0xFF800000> : vector<2x8xf32>
    %56 = vector.multi_reduction <maximumf>, %55, %cst_28 [2] : vector<2x8x8xf32> to vector<2x8xf32>
    %57 = vector.shape_cast %56 : vector<2x8xf32> to vector<2x8x1xf32>
    %58 = vector.broadcast %57 : vector<2x8x1xf32> to vector<2x8x8xf32>
    %59 = arith.subf %55, %58 : vector<2x8x8xf32>
    %60 = math.exp %59 : vector<2x8x8xf32>
    %cst_29 = arith.constant dense<0.000000e+00> : vector<2x8xf32>
    %61 = vector.multi_reduction <add>, %60, %cst_29 [2] : vector<2x8x8xf32> to vector<2x8xf32>
    %62 = vector.shape_cast %61 : vector<2x8xf32> to vector<2x8x1xf32>
    %63 = tpu.reciprocal %62 {approx = true} : vector<2x8x1xf32> -> vector<2x8x1xf32>
    %64 = vector.broadcast %63 : vector<2x8x1xf32> to vector<2x8x8xf32>
    %65 = arith.mulf %60, %64 : vector<2x8x8xf32>
    "tpu.trace_start"() <{level = 10 : i32, message = "bqk,bkd->bqd"}> : () -> ()
    %cst_30 = arith.constant dense<0.000000e+00> : vector<2x8x8xf32>
    %66 = tpu.matmul %65, %54, %cst_30 {dimension_numbers = #tpu.dot_dimension_numbers<[2], [1], [1], [2], [0, 0, 0, 1, 1, 2], [0], [0]>} : vector<2x8x8xf32>, vector<2x8x8xf32>, vector<2x8x8xf32> -> vector<2x8x8xf32>
    "tpu.trace_stop"() : () -> ()
    %67 = vector.shape_cast %66 : vector<2x8x8xf32> to vector<16x8xf32>
    %c0_31 = arith.constant 0 : index
    %c8 = arith.constant 8 : index
    %68 = vector.load %arg12[%c0_31, %c8] : memref<16x32xf32, #tpu.memory_space<vmem>>, vector<16x8xf32>
    tpu.vector_store %arg12[%c0_31, %c8], %67 {strides = array<i32>} : memref<16x32xf32, #tpu.memory_space<vmem>>, vector<16x8xf32>,
    %69 = vector.extract_strided_slice %26 {offsets = [0, 16], sizes = [16, 8], strides = [1, 1]} : vector<16x32xf32> to vector<16x8xf32>
    %70 = vector.shape_cast %69 : vector<16x8xf32> to vector<2x8x8xf32>
    %71 = vector.extract_strided_slice %27 {offsets = [0, 16], sizes = [16, 8], strides = [1, 1]} : vector<16x32xf32> to vector<16x8xf32>
    %72 = vector.shape_cast %71 : vector<16x8xf32> to vector<2x8x8xf32>
    %73 = vector.extract_strided_slice %28 {offsets = [0, 16], sizes = [16, 8], strides = [1, 1]} : vector<16x32xf32> to vector<16x8xf32>
    %74 = vector.shape_cast %73 : vector<16x8xf32> to vector<2x8x8xf32>
    "tpu.trace_start"() <{level = 10 : i32, message = "bqd,bkd->bqk"}> : () -> ()
    %cst_32 = arith.constant dense<0.000000e+00> : vector<2x8x8xf32>
    %75 = tpu.matmul %70, %72, %cst_32 {dimension_numbers = #tpu.dot_dimension_numbers<[2], [2], [1], [1], [0, 0, 0, 1, 1, 1], [0], [0]>} : vector<2x8x8xf32>, vector<2x8x8xf32>, vector<2x8x8xf32> -> vector<2x8x8xf32>
    "tpu.trace_stop"() : () -> ()
    %cst_33 = arith.constant dense<0xFF800000> : vector<2x8xf32>
    %76 = vector.multi_reduction <maximumf>, %75, %cst_33 [2] : vector<2x8x8xf32> to vector<2x8xf32>
    %77 = vector.shape_cast %76 : vector<2x8xf32> to vector<2x8x1xf32>
    %78 = vector.broadcast %77 : vector<2x8x1xf32> to vector<2x8x8xf32>
    %79 = arith.subf %75, %78 : vector<2x8x8xf32>
    %80 = math.exp %79 : vector<2x8x8xf32>
    %cst_34 = arith.constant dense<0.000000e+00> : vector<2x8xf32>
    %81 = vector.multi_reduction <add>, %80, %cst_34 [2] : vector<2x8x8xf32> to vector<2x8xf32>
    %82 = vector.shape_cast %81 : vector<2x8xf32> to vector<2x8x1xf32>
    %83 = tpu.reciprocal %82 {approx = true} : vector<2x8x1xf32> -> vector<2x8x1xf32>
    %84 = vector.broadcast %83 : vector<2x8x1xf32> to vector<2x8x8xf32>
    %85 = arith.mulf %80, %84 : vector<2x8x8xf32>
    "tpu.trace_start"() <{level = 10 : i32, message = "bqk,bkd->bqd"}> : () -> ()
    %cst_35 = arith.constant dense<0.000000e+00> : vector<2x8x8xf32>
    %86 = tpu.matmul %85, %74, %cst_35 {dimension_numbers = #tpu.dot_dimension_numbers<[2], [1], [1], [2], [0, 0, 0, 1, 1, 2], [0], [0]>} : vector<2x8x8xf32>, vector<2x8x8xf32>, vector<2x8x8xf32> -> vector<2x8x8xf32>
    "tpu.trace_stop"() : () -> ()
    %87 = vector.shape_cast %86 : vector<2x8x8xf32> to vector<16x8xf32>
    %c0_36 = arith.constant 0 : index
    %c16 = arith.constant 16 : index
    %88 = vector.load %arg12[%c0_36, %c16] : memref<16x32xf32, #tpu.memory_space<vmem>>, vector<16x8xf32>
    tpu.vector_store %arg12[%c0_36, %c16], %87 {strides = array<i32>} : memref<16x32xf32, #tpu.memory_space<vmem>>, vector<16x8xf32>,
    %89 = vector.extract_strided_slice %26 {offsets = [0, 24], sizes = [16, 8], strides = [1, 1]} : vector<16x32xf32> to vector<16x8xf32>
    %90 = vector.shape_cast %89 : vector<16x8xf32> to vector<2x8x8xf32>
    %91 = vector.extract_strided_slice %27 {offsets = [0, 24], sizes = [16, 8], strides = [1, 1]} : vector<16x32xf32> to vector<16x8xf32>
    %92 = vector.shape_cast %91 : vector<16x8xf32> to vector<2x8x8xf32>
    %93 = vector.extract_strided_slice %28 {offsets = [0, 24], sizes = [16, 8], strides = [1, 1]} : vector<16x32xf32> to vector<16x8xf32>
    %94 = vector.shape_cast %93 : vector<16x8xf32> to vector<2x8x8xf32>
    "tpu.trace_start"() <{level = 10 : i32, message = "bqd,bkd->bqk"}> : () -> ()
    %cst_37 = arith.constant dense<0.000000e+00> : vector<2x8x8xf32>
    %95 = tpu.matmul %90, %92, %cst_37 {dimension_numbers = #tpu.dot_dimension_numbers<[2], [2], [1], [1], [0, 0, 0, 1, 1, 1], [0], [0]>} : vector<2x8x8xf32>, vector<2x8x8xf32>, vector<2x8x8xf32> -> vector<2x8x8xf32>
    "tpu.trace_stop"() : () -> ()
    %cst_38 = arith.constant dense<0xFF800000> : vector<2x8xf32>
    %96 = vector.multi_reduction <maximumf>, %95, %cst_38 [2] : vector<2x8x8xf32> to vector<2x8xf32>
    %97 = vector.shape_cast %96 : vector<2x8xf32> to vector<2x8x1xf32>
    %98 = vector.broadcast %97 : vector<2x8x1xf32> to vector<2x8x8xf32>
    %99 = arith.subf %95, %98 : vector<2x8x8xf32>
    %100 = math.exp %99 : vector<2x8x8xf32>
    %cst_39 = arith.constant dense<0.000000e+00> : vector<2x8xf32>
    %101 = vector.multi_reduction <add>, %100, %cst_39 [2] : vector<2x8x8xf32> to vector<2x8xf32>
    %102 = vector.shape_cast %101 : vector<2x8xf32> to vector<2x8x1xf32>
    %103 = tpu.reciprocal %102 {approx = true} : vector<2x8x1xf32> -> vector<2x8x1xf32>
    %104 = vector.broadcast %103 : vector<2x8x1xf32> to vector<2x8x8xf32>
    %105 = arith.mulf %100, %104 : vector<2x8x8xf32>
    "tpu.trace_start"() <{level = 10 : i32, message = "bqk,bkd->bqd"}> : () -> ()
    %cst_40 = arith.constant dense<0.000000e+00> : vector<2x8x8xf32>
    %106 = tpu.matmul %105, %94, %cst_40 {dimension_numbers = #tpu.dot_dimension_numbers<[2], [1], [1], [2], [0, 0, 0, 1, 1, 2], [0], [0]>} : vector<2x8x8xf32>, vector<2x8x8xf32>, vector<2x8x8xf32> -> vector<2x8x8xf32>
    "tpu.trace_stop"() : () -> ()
    %107 = vector.shape_cast %106 : vector<2x8x8xf32> to vector<16x8xf32>
    %c0_41 = arith.constant 0 : index
    %c24 = arith.constant 24 : index
    %108 = vector.load %arg12[%c0_41, %c24] : memref<16x32xf32, #tpu.memory_space<vmem>>, vector<16x8xf32>
    tpu.vector_store %arg12[%c0_41, %c24], %107 {strides = array<i32>} : memref<16x32xf32, #tpu.memory_space<vmem>>, vector<16x8xf32>,
    %c0_42 = arith.constant 0 : index
    %c0_43 = arith.constant 0 : index
    %109 = vector.load %arg12[%c0_42, %c0_43] : memref<16x32xf32, #tpu.memory_space<vmem>>, vector<16x32xf32>
    %110 = arith.truncf %109 : vector<16x32xf32> to vector<16x32xbf16>
    %cst_44 = arith.constant dense<0.000000e+00> : vector<16x32xf32>
    %111 = tpu.matmul %110, %7, %cst_44 {dimension_numbers = #tpu.dot_dimension_numbers<[1], [0], [0], [1], [0, 0, 1, 1], [], []>} : vector<16x32xbf16>, vector<32x32xbf16>, vector<16x32xf32> -> vector<16x32xf32>
    %112 = vector.broadcast %14 : vector<1x32xf32> to vector<16x32xf32>
    %113 = arith.addf %111, %112 : vector<16x32xf32>
    %114 = arith.addf %113, %3 : vector<16x32xf32>
    %cst_45 = arith.constant dense<0.000000e+00> : vector<16xf32>
    %115 = vector.multi_reduction <add>, %114, %cst_45 [1] : vector<16x32xf32> to vector<16xf32>
    %116 = vector.shape_cast %115 : vector<16xf32> to vector<16x1xf32>
    %cst_46 = arith.constant 3.200000e+01 : f32
    %117 = vector.broadcast %cst_46 : f32 to vector<16x1xf32>
    %118 = arith.divf %116, %117 : vector<16x1xf32>
    %119 = vector.broadcast %118 : vector<16x1xf32> to vector<16x32xf32>
    %120 = arith.subf %114, %119 : vector<16x32xf32>
    %121 = arith.mulf %120, %120 : vector<16x32xf32>
    %cst_47 = arith.constant dense<0.000000e+00> : vector<16xf32>
    %122 = vector.multi_reduction <add>, %121, %cst_47 [1] : vector<16x32xf32> to vector<16xf32>
    %123 = vector.shape_cast %122 : vector<16xf32> to vector<16x1xf32>
    %cst_48 = arith.constant 3.200000e+01 : f32
    %124 = vector.broadcast %cst_48 : f32 to vector<16x1xf32>
    %125 = arith.divf %123, %124 : vector<16x1xf32>
    %126 = vector.broadcast %118 : vector<16x1xf32> to vector<16x32xf32>
    %127 = arith.subf %114, %126 : vector<16x32xf32>
    %cst_49 = arith.constant 9.99999974E-6 : f32
    %128 = vector.broadcast %cst_49 : f32 to vector<16x1xf32>
    %129 = arith.addf %125, %128 : vector<16x1xf32>
    %130 = math.rsqrt %129 : vector<16x1xf32>
    %131 = vector.broadcast %130 : vector<16x1xf32> to vector<16x32xf32>
    %132 = arith.mulf %127, %131 : vector<16x32xf32>
    %133 = vector.broadcast %15 : vector<1x32xf32> to vector<16x32xf32>
    %134 = arith.mulf %132, %133 : vector<16x32xf32>
    %135 = vector.broadcast %16 : vector<1x32xf32> to vector<16x32xf32>
    %136 = arith.addf %134, %135 : vector<16x32xf32>
    %137 = arith.truncf %136 : vector<16x32xf32> to vector<16x32xbf16>
    %cst_50 = arith.constant dense<0.000000e+00> : vector<16x128xf32>
    %138 = tpu.matmul %137, %9, %cst_50 {dimension_numbers = #tpu.dot_dimension_numbers<[1], [0], [0], [1], [0, 0, 1, 1], [], []>} : vector<16x32xbf16>, vector<32x128xbf16>, vector<16x128xf32> -> vector<16x128xf32>
    %139 = vector.broadcast %21 : vector<1x128xf32> to vector<16x128xf32>
    %140 = arith.addf %138, %139 : vector<16x128xf32>
    %cst_51 = arith.constant 0.000000e+00 : f32
    %141 = vector.broadcast %cst_51 : f32 to vector<16x128xf32>
    %142 = arith.maximumf %140, %141 : vector<16x128xf32>
    %143 = arith.truncf %142 : vector<16x128xf32> to vector<16x128xbf16>
    %cst_52 = arith.constant dense<0.000000e+00> : vector<16x32xf32>
    %144 = tpu.matmul %143, %11, %cst_52 {dimension_numbers = #tpu.dot_dimension_numbers<[1], [0], [0], [1], [0, 0, 1, 1], [], []>} : vector<16x128xbf16>, vector<128x32xbf16>, vector<16x32xf32> -> vector<16x32xf32>
    %145 = vector.broadcast %17 : vector<1x32xf32> to vector<16x32xf32>
    %146 = arith.addf %144, %145 : vector<16x32xf32>
    %147 = arith.addf %146, %136 : vector<16x32xf32>
    %cst_53 = arith.constant dense<0.000000e+00> : vector<16xf32>
    %148 = vector.multi_reduction <add>, %147, %cst_53 [1] : vector<16x32xf32> to vector<16xf32>
    %149 = vector.shape_cast %148 : vector<16xf32> to vector<16x1xf32>
    %cst_54 = arith.constant 3.200000e+01 : f32
    %150 = vector.broadcast %cst_54 : f32 to vector<16x1xf32>
    %151 = arith.divf %149, %150 : vector<16x1xf32>
    %152 = vector.broadcast %151 : vector<16x1xf32> to vector<16x32xf32>
    %153 = arith.subf %147, %152 : vector<16x32xf32>
    %154 = arith.mulf %153, %153 : vector<16x32xf32>
    %cst_55 = arith.constant dense<0.000000e+00> : vector<16xf32>
    %155 = vector.multi_reduction <add>, %154, %cst_55 [1] : vector<16x32xf32> to vector<16xf32>
    %156 = vector.shape_cast %155 : vector<16xf32> to vector<16x1xf32>
    %cst_56 = arith.constant 3.200000e+01 : f32
    %157 = vector.broadcast %cst_56 : f32 to vector<16x1xf32>
    %158 = arith.divf %156, %157 : vector<16x1xf32>
    %159 = vector.broadcast %151 : vector<16x1xf32> to vector<16x32xf32>
    %160 = arith.subf %147, %159 : vector<16x32xf32>
    %cst_57 = arith.constant 9.99999974E-6 : f32
    %161 = vector.broadcast %cst_57 : f32 to vector<16x1xf32>
    %162 = arith.addf %158, %161 : vector<16x1xf32>
    %163 = math.rsqrt %162 : vector<16x1xf32>
    %164 = vector.broadcast %163 : vector<16x1xf32> to vector<16x32xf32>
    %165 = arith.mulf %160, %164 : vector<16x32xf32>
    %166 = vector.broadcast %18 : vector<1x32xf32> to vector<16x32xf32>
    %167 = arith.mulf %165, %166 : vector<16x32xf32>
    %168 = vector.broadcast %19 : vector<1x32xf32> to vector<16x32xf32>
    %169 = arith.addf %167, %168 : vector<16x32xf32>
    %c1_i32 = arith.constant 1 : i32
    %170 = arith.cmpi slt, %arg0, %c1_i32 : i32
    %171 = arith.extui %170 : i1 to i32
    %c0_i32_58 = arith.constant 0 : i32
    %172 = arith.cmpi ne, %171, %c0_i32_58 : i32
    scf.if %172 {
      %c0_61 = arith.constant 0 : index
      %c0_62 = arith.constant 0 : index
      %176 = vector.load %arg11[%c0_61, %c0_62] : memref<16x32xf32, #tpu.memory_space<vmem>>, vector<16x32xf32>
      tpu.vector_store %arg11[%c0_61, %c0_62], %169 {strides = array<i32>} : memref<16x32xf32, #tpu.memory_space<vmem>>, vector<16x32xf32>,
    } else {
    }
    %c1_i32_59 = arith.constant 1 : i32
    %173 = arith.cmpi eq, %arg0, %c1_i32_59 : i32
    %174 = arith.extui %173 : i1 to i32
    %c0_i32_60 = arith.constant 0 : i32
    %175 = arith.cmpi ne, %174, %c0_i32_60 : i32
    scf.if %175 {
      %176 = vector.extract_strided_slice %169 {offsets = [0, 0], sizes = [8, 32], strides = [1, 1]} : vector<16x32xf32> to vector<8x32xf32>
      %cst_61 = arith.constant dense<0xFF800000> : vector<32xf32>
      %177 = vector.multi_reduction <maximumf>, %176, %cst_61 [0] : vector<8x32xf32> to vector<32xf32>
      %178 = vector.shape_cast %177 : vector<32xf32> to vector<1x32xf32>
      %179 = vector.extract_strided_slice %169 {offsets = [8, 0], sizes = [8, 32], strides = [1, 1]} : vector<16x32xf32> to vector<8x32xf32>
      %cst_62 = arith.constant dense<0xFF800000> : vector<32xf32>
      %180 = vector.multi_reduction <maximumf>, %179, %cst_62 [0] : vector<8x32xf32> to vector<32xf32>
      %181 = vector.shape_cast %180 : vector<32xf32> to vector<1x32xf32>
      %182 = tpu.concatenate %178, %181 in 0 : vector<1x32xf32>, vector<1x32xf32> -> vector<2x32xf32>
      %c0_63 = arith.constant 0 : index
      %c0_64 = arith.constant 0 : index
      %183 = vector.load %arg8[%c0_63, %c0_64] : memref<32x128xbf16, #tpu.memory_space<vmem>>, vector<32x128xbf16>
      %184 = arith.truncf %182 : vector<2x32xf32> to vector<2x32xbf16>
      %cst_65 = arith.constant dense<0.000000e+00> : vector<2x128xf32>
      %185 = tpu.matmul %184, %183, %cst_65 {dimension_numbers = #tpu.dot_dimension_numbers<[1], [0], [0], [1], [0, 0, 1, 1], [], []>} : vector<2x32xbf16>, vector<32x128xbf16>, vector<2x128xf32> -> vector<2x128xf32>
      %c0_66 = arith.constant 0 : index
      %c0_67 = arith.constant 0 : index
      %186 = vector.load %arg9[%c0_66, %c0_67] : memref<1x128xf32, #tpu.memory_space<vmem>>, vector<1x128xf32>
      %187 = vector.broadcast %186 : vector<1x128xf32> to vector<2x128xf32>
      %188 = arith.addf %185, %187 : vector<2x128xf32>
      %cst_68 = arith.constant dense<0xFF800000> : vector<2xf32>
      %189 = vector.multi_reduction <maximumf>, %188, %cst_68 [1] : vector<2x128xf32> to vector<2xf32>
      %190 = vector.shape_cast %189 : vector<2xf32> to vector<2x1xf32>
      %191 = vector.broadcast %190 : vector<2x1xf32> to vector<2x128xf32>
      %192 = arith.subf %188, %191 : vector<2x128xf32>
      %193 = math.exp %192 : vector<2x128xf32>
      %cst_69 = arith.constant dense<0.000000e+00> : vector<2xf32>
      %194 = vector.multi_reduction <add>, %193, %cst_69 [1] : vector<2x128xf32> to vector<2xf32>
      %195 = vector.shape_cast %194 : vector<2xf32> to vector<2x1xf32>
      %196 = math.log %195 : vector<2x1xf32>
      %197 = vector.broadcast %196 : vector<2x1xf32> to vector<2x128xf32>
      %198 = arith.subf %192, %197 : vector<2x128xf32>
      %c0_70 = arith.constant 0 : index
      %c0_71 = arith.constant 0 : index
      %199 = vector.load %arg10[%c0_70, %c0_71] : memref<2x128xf32, #tpu.memory_space<vmem>>, vector<2x128xf32>
      tpu.vector_store %arg10[%c0_70, %c0_71], %198 {strides = array<i32>} : memref<2x128xf32, #tpu.memory_space<vmem>>, vector<2x128xf32>,
    } else {
    }
    return
  }
  func.func @transform_0(%arg0: i32) -> (i32, i32) {
    %c0_i32 = arith.constant 0 : i32
    %c0_i32_0 = arith.constant 0 : i32
    %c0_i32_1 = arith.constant 0 : i32
    return %c0_i32, %c0_i32_0 : i32, i32
  }
  func.func @transform_1(%arg0: i32) -> (i32, i32, i32) {
    %c0_i32 = arith.constant 0 : i32
    %c0_i32_0 = arith.constant 0 : i32
    %c0_i32_1 = arith.constant 0 : i32
    return %arg0, %c0_i32, %c0_i32_0 : i32, i32, i32
  }
  func.func @transform_2(%arg0: i32) -> (i32, i32, i32) {
    %c0_i32 = arith.constant 0 : i32
    %c0_i32_0 = arith.constant 0 : i32
    %c0_i32_1 = arith.constant 0 : i32
    return %arg0, %c0_i32, %c0_i32_0 : i32, i32, i32
  }
  func.func @transform_3(%arg0: i32) -> (i32, i32, i32) {
    %c0_i32 = arith.constant 0 : i32
    %c0_i32_0 = arith.constant 0 : i32
    %c0_i32_1 = arith.constant 0 : i32
    return %arg0, %c0_i32, %c0_i32_0 : i32, i32, i32
  }
  func.func @transform_4(%arg0: i32) -> (i32, i32, i32) {
    %c0_i32 = arith.constant 0 : i32
    %c0_i32_0 = arith.constant 0 : i32
    %c0_i32_1 = arith.constant 0 : i32
    return %arg0, %c0_i32, %c0_i32_0 : i32, i32, i32
  }
  func.func @transform_5(%arg0: i32) -> (i32, i32, i32) {
    %c0_i32 = arith.constant 0 : i32
    %c0_i32_0 = arith.constant 0 : i32
    %c0_i32_1 = arith.constant 0 : i32
    return %arg0, %c0_i32, %c0_i32_0 : i32, i32, i32
  }
  func.func @transform_6(%arg0: i32) -> (i32, i32, i32) {
    %c0_i32 = arith.constant 0 : i32
    %c0_i32_0 = arith.constant 0 : i32
    %c0_i32_1 = arith.constant 0 : i32
    return %arg0, %c0_i32, %c0_i32_0 : i32, i32, i32
  }
  func.func @transform_7(%arg0: i32) -> (i32, i32) {
    %c0_i32 = arith.constant 0 : i32
    %c0_i32_0 = arith.constant 0 : i32
    %c0_i32_1 = arith.constant 0 : i32
    return %c0_i32, %c0_i32_0 : i32, i32
  }
  func.func @transform_8(%arg0: i32) -> (i32, i32) {
    %c0_i32 = arith.constant 0 : i32
    %c0_i32_0 = arith.constant 0 : i32
    %c0_i32_1 = arith.constant 0 : i32
    return %c0_i32, %c0_i32_0 : i32, i32
  }
  func.func @transform_9(%arg0: i32) -> (i32, i32) {
    %c0_i32 = arith.constant 0 : i32
    %c0_i32_0 = arith.constant 0 : i32
    %c0_i32_1 = arith.constant 0 : i32
    return %c0_i32, %c0_i32_0 : i32, i32
  }
}

</mosaic_0001>

<bundles_post_ra>
// kernel: tpu_custom_call.1
= control target key start
LH: loop header
LB: loop body
LE: loop exit
PB: predicated region body
PF: predicated region fallthrough
CT: control target
= control target key end

     0   :  { %14 = vsyncpa [#allocation5], 0  ;;  %s2834_s30 = smov 0   ;;  %s3125_s0 = inlined_call_operand.vmem [shape: f32[16,32], index: 0, kind: input, shape index: {}]   ;;  %s3126_s1 = inlined_call_operand.vmem [shape: bf16[2,32,96], index: 1, kind: input, shape index: {}]   ;;  %s3127_s2 = inlined_call_operand.vmem [shape: bf16[2,32,32], index: 2, kind: input, shape index: {}]   ;;  %s3128_s3 = inlined_call_operand.vmem [shape: bf16[2,32,128], index: 3, kind: input, shape index: {}]   ;;  %s3129_s4 = inlined_call_operand.vmem [shape: bf16[2,128,32], index: 4, kind: input, shape index: {}]   ;;  %s3130_s5 = inlined_call_operand.vmem [shape: f32[2,8,32], index: 5, kind: input, shape index: {}]   ;;  %s3131_s6 = inlined_call_operand.vmem [shape: f32[2,1,128], index: 6, kind: input, shape index: {}]   ;;  %s3132_s7 = inlined_call_operand.vmem [shape: bf16[32,128], index: 7, kind: input, shape index: {}]   ;;  %s3133_s8 = inlined_call_operand.vmem [shape: f32[1,128], index: 8, kind: input, shape index: {}]   ;;  %s3134_s9 = inlined_call_operand.hbm [shape: f32[2,128], index: 9, kind: output, shape index: {}]  }
   0x1 LB: > { %s2840_s10 = sadd.s32 4294967295, %s2763_s30   ;;  %p2384_p0 = scmp.ge.s32.totalorder %s2763_s30, 1  ;;  %s2763_s30 = sphi %s2834_s30, %s20_s30  }
   0x2   : > { %p330_p1 = scmp.lt.s32.totalorder %s2763_s30, 3 }
   0x4   : > { %p331_p2 = pnand %p2384_p0, %p330_p1 }
   0x5   : > { %p383_p3 = scmp.lt.s32.totalorder (!%p331_p2), %s2840_s10, 1  ;;  %p2394_p4 = scmp.ne.s32.totalorder (!%p331_p2), %s2840_s10, 0 }
   0x6   : > { %334 = sbr.rel (%p331_p2) target bundleno = 4470 (0x1176), region = 56 }
   0xb   : > { %s2846_s11 = scalar_select %p383_p3, %s2840_s10, 1 }
   0xd   : > { %s2447_s12 = sshll.u32 %s2846_s11, 4  ;;  %s2450_s13 = sshll.u32 %s2846_s11, 6 }
   0xe   : > { %s387_s16 = scalar_lea.vmem %s3126_s1, %s2447_s12  ;;  %s2856_s19 = scalar_lea.vmem %s3127_s2, %s2447_s12 }
   0xf   : > { %s2861_s22 = scalar_lea.vmem %s3128_s3, %s2447_s12  ;;  %s2866_s25 = scalar_lea.vmem %s3129_s4, %s2450_s13 }
  0x10   : > { %s2393_s26 = sshll.u32 %s2846_s11, 3  ;;  %s409_s29 = scalar_lea.vmem %s3131_s6, %s2846_s11 }
  0x11   : > { %s2876_s17 = scalar_lea.vmem %s3130_s5, %s2393_s26  ;;  %414 = sbr.rel (%p2394_p4) target bundleno = 24 (0x18), region = 60 }
  0x16   : > { %v415_v0 = vld [vmem:[%s3125_s0] sm:$0xff]  ;;  %vm417_vm0 = vcmask 261120   ;;  %v416_v1 = vld [vmem:[%s3125_s0 + $0x8] sm:$0xff] }
  0x17   : > { %418 = vst.msk [vmem:[#allocation2] sm:$0xff] %vm417_vm0, %v415_v0  ;;  %419 = vst.msk [vmem:[#allocation2 + $0x8] sm:$0xff] %vm417_vm0, %v416_v1 }
  0x18 PF: > { %v2669_v2 = vld [vmem:[%s387_s16 + $0x8] sm:$0xff]   ;;  %v2765_v3 = vmov 0.0   ;;  %v2670_v4 = vld [vmem:[%s387_s16] sm:$0xff]   ;;  %vm2766_vm1 = vmmov 0   ;;  %vm465_vm2 = vcmask 261120   ;;  %s2767_s16 = smov 96  }
  0x19   : > { %2504 = vmatprep.subr.bf16.mxu0 %v2765_v3  ;;  %2517 = vmatprep.subr.mxu1 %v2765_v3  ;;  %vm515_vm3 = vcmask 64512   ;;  %s2768_s21 = smov 64   ;;  %s2769_s23 = smov 88   ;;  %vm1183_vm4 = vcmask 130112   ;;  %vm1524_vm5 = vcmask 195712   ;;  %vm1865_vm6 = vcmask 261312  }
  0x1a   : > { %2505 = vmatpush3.bf16.msra.mxu0 %v2669_v2  ;;  %2508 = vmatprep.mubr.msk.bf16.mxu0 %vm2766_vm1, %v2765_v3  ;;  %s2770_s24 = smov 120   ;;  %s2771_s26 = smov 56  }
  0x1b   : > { %2506 = vmatprep.subr.bf16.mxu0 %v2765_v3  ;;  %2519 = vmatprep.mubr.msk.f32.mxu1 %vm2766_vm1, %v2765_v3  ;;  %s2772_s27 = smov 80   ;;  %s2773_s28 = smov 112  }
  0x1c   : > { %s2774_s14 = smov 48   ;;  %s2775_s15 = smov 72  }
  0x1d   : > { %s2776_s12 = smov 104   ;;  %s2777_s18 = smov 40  }
  0x1e   : > { %v2889_v5 = vld [vmem:[#allocation2] sm:$0xff]  ;;  %v2891_v6 = vld [vmem:[#allocation2 + $0x8] sm:$0xff]  ;;  %2507 = vmatpush3.bf16.msra.mxu0 %v2670_v4  ;;  %s2778_s13 = smov 8   ;;  %s2779_s20 = smov 16  }
  0x1f   : > { %v452_v7 = vpack.c.bf16 %v2891_v6, %v2889_v5  ;;  %2512 = vmatprep.subr.mxu0 %v2765_v3  ;;  %p2437_p5 = scmp.ge.s32.totalorder %s2840_s10, 1 }
  0x21   : > { %2509 = vmatmul.mubr.msk.bf16.vlgmr.msra.gmra.mxu0 %vm465_vm2, %v452_v7 }
  0x22   : > { %2514 = vmatprep.mubr.msk.f32.mxu0 %vm2766_vm1, %v2765_v3 }
  0xe1   : > { %v2902_v8 = vpop.f32.mrf.mxu0 }
  0xe2   : > { %513 = vrot.lane.b32.xlu0 %v2902_v8, %s2767_s16  ;;  %v2910_v13 = vmul.f32 0.35355338, %v2902_v8 }
  0xe3   : > { %v2510_v9 = vpop.f32.mrf.mxu0 }
  0xe5   : > { %v2905_v10 = vpop.f32.mrf.mxu0 }
  0xe6   : > { %592 = vrot.lane.b32.xlu0 %v2905_v10, %s2767_s16  ;;  %v2919_v15 = vmul.f32 0.35355338, %v2905_v10  ;;  %s2780_s16 = smov 24  }
  0xe7   : > { %v2511_v11 = vpop.f32.mrf.mxu0 }
 0x154   : > { %v514_v12 = vpop.permute.xlu0 %513 }
 0x155   : > { %2513 = vmatpush3.xpose.msk.msra.mxu0 %vm515_vm3, %v514_v12 }
 0x156   : > { %2527 = vmatprep.subr.mxu0 %v2765_v3 }
 0x158   : > { %2515 = vmatmul.mubr.msk.f32.vlgmr.msra.gmra.mxu0 %vm515_vm3, %v2910_v13  ;;  %v593_v14 = vpop.permute.xlu0 %592 }
 0x159   : > { %2518 = vmatpush3.xpose.msk.msra.mxu1 %vm515_vm3, %v593_v14  ;;  %2529 = vmatprep.mubr.msk.f32.mxu0 %vm2766_vm1, %v2765_v3 }
 0x15a   : > { %2522 = vmatprep.subr.mxu1 %v2765_v3 }
 0x15c   : > { %2520 = vmatmul.mubr.msk.f32.vlgmr.msra.gmra.mxu1 %vm515_vm3, %v2919_v15 }
 0x15d   : > { %2524 = vmatprep.mubr.msk.f32.mxu1 %vm2766_vm1, %v2765_v3 }
 0x218   : > { %v587_v16 = vpop.f32.mrf.mxu0 }
 0x219   : > { %v669_v17 = vsel %vm515_vm3, %v587_v16, -inf }
 0x21a   : > { %670 = vmax.xlane.f32.xlu1 %v669_v17  ;;  %v2516_v18 = vpop.f32.mrf.mxu0 }
 0x21c   : > { %v665_v19 = vpop.f32.mrf.mxu1 }
 0x21d   : > { %v672_v20 = vsel %vm515_vm3, %v665_v19, -inf }
 0x21e   : > { %v2521_v21 = vpop.f32.mrf.mxu1  ;;  %673 = vmax.xlane.f32.xlu1 %v672_v20 }
 0x22f   : > { %691 = vrot.lane.b32.xlu1 %v2902_v8, %s2768_s21 }
 0x233   : > { %767 = vrot.lane.b32.xlu1 %v2905_v10, %s2768_s21 }
 0x237   : > { %847 = vrot.lane.b32.xlu1 %v2902_v8, %s2769_s23 }
 0x23b   : > { %925 = vrot.lane.b32.xlu1 %v2905_v10, %s2769_s23 }
 0x2a3   : > { %v671_v22 = vpop.xlane.xlu1 %670 }
 0x2a4   : > { %v675_v23 = vsub.f32 %v587_v16, %v671_v22 }
 0x2a6   : > { %v677_v24 = vmul.f32 1.442695, %v675_v23 }
 0x2a7   : > { %v674_v25 = vpop.xlane.xlu1 %673 }
 0x2a8   : > { %2683 = vpow2.f32 %v677_v24  ;;  %v676_v26 = vsub.f32 %v665_v19, %v674_v25 }
 0x2aa   : > { %v679_v27 = vmul.f32 1.442695, %v676_v26 }
 0x2ab   : > { %v692_v28 = vpop.permute.xlu1 %691 }
 0x2ac   : > { %2685 = vpow2.f32 %v679_v27  ;;  %2523 = vmatpush3.msra.mxu1 %v692_v28 }
 0x2ad   : > { %2532 = vmatprep.subr.mxu1 %v2765_v3 }
 0x2af   : > { %v768_v29 = vpop.permute.xlu1 %767 }
 0x2b0   : > { %2528 = vmatpush3.msra.mxu0 %v768_v29 }
 0x2b1   : > { %2537 = vmatprep.subr.mxu0 %v2765_v3 }
 0x2b3   : > { %v848_v34 = vpop.permute.xlu1 %847 }
 0x2b5   : > { %v2684_v30 = vpop.eup %2683 }
 0x2b6   : > { %v681_v31 = vsel %vm515_vm3, %v2684_v30, 0.0 }
 0x2b7   : > { %682 = vadd.xlane.f32.xlu0 %v681_v31  ;;  %v926_v35 = vpop.permute.xlu1 %925 }
 0x2b9   : > { %v2686_v32 = vpop.eup %2685 }
 0x2ba   : > { %v684_v33 = vsel %vm515_vm3, %v2686_v32, 0.0 }
 0x2bb   : > { %685 = vadd.xlane.f32.xlu1 %v684_v33 }
 0x2cc   : > { %923 = vrot.lane.b32.xlu1 %v2919_v15, %s2770_s24 }
 0x2cd   : > { %845 = vrot.lane.b32.xlu0 %v2910_v13, %s2770_s24 }
 0x340   : > { %v683_v36 = vpop.xlane.xlu0 %682 }
 0x341   : > { %2687 = vrcp.f32 %v683_v36 }
 0x344   : > { %v686_v37 = vpop.xlane.xlu1 %685  ;;  %v846_v42 = vpop.permute.xlu0 %845 }
 0x345   : > { %2689 = vrcp.f32 %v686_v37 }
 0x348   : > { %v924_v43 = vpop.permute.xlu1 %923 }
 0x34e   : > { %v2688_v38 = vpop.eup %2687 }
 0x34f   : > { %v689_v39 = vmul.f32 %v2688_v38, %v2684_v30 }
 0x351   : > { %2525 = vmatmul.mubr.msk.f32.vlgmr.msra.gmra.mxu1 %vm515_vm3, %v689_v39 }
 0x352   : > { %v2690_v40 = vpop.eup %2689  ;;  %2533 = vmatpush3.xpose.msk.msra.mxu1 %vm515_vm3, %v848_v34  ;;  %2534 = vmatprep.mubr.msk.f32.mxu1 %vm2766_vm1, %v2765_v3 }
 0x353   : > { %v690_v41 = vmul.f32 %v2690_v40, %v2686_v32  ;;  %2542 = vmatprep.subr.mxu1 %v2765_v3 }
 0x355   : > { %2530 = vmatmul.mubr.msk.f32.vlgmr.msra.gmra.mxu0 %vm515_vm3, %v690_v41  ;;  %2535 = vmatmul.mubr.msk.f32.vlgmr.msra.gmra.mxu1 %vm515_vm3, %v846_v42 }
 0x356   : > { %2538 = vmatpush3.xpose.msk.msra.mxu0 %vm515_vm3, %v926_v35  ;;  %2539 = vmatprep.mubr.msk.f32.mxu0 %vm2766_vm1, %v2765_v3 }
 0x357   : > { %2547 = vmatprep.subr.mxu0 %v2765_v3  ;;  %2544 = vmatprep.mubr.msk.f32.mxu1 %vm2766_vm1, %v2765_v3 }
 0x359   : > { %2540 = vmatmul.mubr.msk.f32.vlgmr.msra.gmra.mxu0 %vm515_vm3, %v924_v43 }
 0x35a   : > { %2549 = vmatprep.mubr.msk.f32.mxu0 %vm2766_vm1, %v2765_v3 }
 0x411   : > { %v763_v44 = vpop.f32.mrf.mxu1 }
 0x412   : > { %843 = vst.msk [vmem:[#allocation3] sm:$0xff] %vm515_vm3, %v763_v44 }
 0x413   : > { %v2526_v45 = vpop.f32.mrf.mxu1 }
 0x415   : > { %v839_v46 = vpop.f32.mrf.mxu0  ;;  %v919_v47 = vpop.f32.mrf.mxu1 }
 0x416   : > { %844 = vst.msk [vmem:[#allocation3 + $0x8] sm:$0xff] %vm515_vm3, %v839_v46  ;;  %v1001_v48 = vsel %vm515_vm3, %v919_v47, -inf }
 0x417   : > { %1002 = vmax.xlane.f32.xlu1 %v1001_v48  ;;  %v2531_v49 = vpop.f32.mrf.mxu0  ;;  %v2536_v50 = vpop.f32.mrf.mxu1 }
 0x419   : > { %v997_v51 = vpop.f32.mrf.mxu0 }
 0x41a   : > { %v1004_v52 = vsel %vm515_vm3, %v997_v51, -inf }
 0x41b   : > { %1005 = vmax.xlane.f32.xlu0 %v1004_v52  ;;  %v2541_v53 = vpop.f32.mrf.mxu0 }
 0x428   : > { %1023 = vrot.lane.b32.xlu1 %v2902_v8, %s2771_s26 }
 0x42c   : > { %1188 = vrot.lane.b32.xlu1 %v2902_v8, %s2772_s27 }
 0x430   : > { %1266 = vrot.lane.b32.xlu1 %v2905_v10, %s2772_s27 }
 0x431   : > { %1099 = vrot.lane.b32.xlu0 %v2905_v10, %s2771_s26 }
 0x435   : > { %1186 = vrot.lane.b32.xlu0 %v2910_v13, %s2773_s28 }
 0x4a0   : > { %v1003_v54 = vpop.xlane.xlu1 %1002 }
 0x4a1   : > { %v1007_v55 = vsub.f32 %v919_v47, %v1003_v54 }
 0x4a3   : > { %v1009_v56 = vmul.f32 1.442695, %v1007_v55 }
 0x4a4   : > { %v1024_v57 = vpop.permute.xlu1 %1023  ;;  %v1006_v58 = vpop.xlane.xlu0 %1005 }
 0x4a5   : > { %2691 = vpow2.f32 %v1009_v56  ;;  %v1008_v59 = vsub.f32 %v997_v51, %v1006_v58  ;;  %2543 = vmatpush3.msra.mxu1 %v1024_v57 }
 0x4a6   : > { %2552 = vmatprep.subr.mxu1 %v2765_v3 }
 0x4a7   : > { %v1011_v60 = vmul.f32 1.442695, %v1008_v59 }
 0x4a8   : > { %v1100_v61 = vpop.permute.xlu0 %1099  ;;  %v1189_v2 = vpop.permute.xlu1 %1188 }
 0x4a9   : > { %2693 = vpow2.f32 %v1011_v60  ;;  %2548 = vmatpush3.msra.mxu0 %v1100_v61 }
 0x4aa   : > { %2557 = vmatprep.subr.mxu0 %v2765_v3 }
 0x4ac   : > { %v1267_v4 = vpop.permute.xlu1 %1266  ;;  %v1187_v17 = vpop.permute.xlu0 %1186 }
 0x4b2   : > { %v2692_v62 = vpop.eup %2691 }
 0x4b3   : > { %v1013_v63 = vsel %vm515_vm3, %v2692_v62, 0.0 }
 0x4b4   : > { %1014 = vadd.xlane.f32.xlu1 %v1013_v63 }
 0x4b6   : > { %v2694_v0 = vpop.eup %2693 }
 0x4b7   : > { %v1016_v1 = vsel %vm515_vm3, %v2694_v0, 0.0 }
 0x4b8   : > { %1017 = vadd.xlane.f32.xlu1 %v1016_v1 }
 0x4c9   : > { %1264 = vrot.lane.b32.xlu1 %v2919_v15, %s2773_s28 }
 0x53d   : > { %v1015_v7 = vpop.xlane.xlu1 %1014 }
 0x53e   : > { %2695 = vrcp.f32 %v1015_v7 }
 0x541   : > { %v1018_v9 = vpop.xlane.xlu1 %1017 }
 0x542   : > { %2697 = vrcp.f32 %v1018_v9 }
 0x545   : > { %v1265_v18 = vpop.permute.xlu1 %1264 }
 0x54b   : > { %v2696_v11 = vpop.eup %2695 }
 0x54c   : > { %v1021_v12 = vmul.f32 %v2696_v11, %v2692_v62 }
 0x54e   : > { %2545 = vmatmul.mubr.msk.f32.vlgmr.msra.gmra.mxu1 %vm515_vm3, %v1021_v12 }
 0x54f   : > { %v2698_v14 = vpop.eup %2697  ;;  %2553 = vmatpush3.xpose.msk.msra.mxu1 %vm515_vm3, %v1189_v2  ;;  %2554 = vmatprep.mubr.msk.f32.mxu1 %vm2766_vm1, %v2765_v3 }
 0x550   : > { %v1022_v16 = vmul.f32 %v2698_v14, %v2694_v0  ;;  %2562 = vmatprep.subr.mxu1 %v2765_v3 }
 0x552   : > { %2550 = vmatmul.mubr.msk.f32.vlgmr.msra.gmra.mxu0 %vm515_vm3, %v1022_v16  ;;  %2555 = vmatmul.mubr.msk.f32.vlgmr.msra.gmra.mxu1 %vm515_vm3, %v1187_v17 }
 0x553   : > { %2558 = vmatpush3.xpose.msk.msra.mxu0 %vm515_vm3, %v1267_v4  ;;  %2559 = vmatprep.mubr.msk.f32.mxu0 %vm2766_vm1, %v2765_v3 }
 0x554   : > { %2567 = vmatprep.subr.mxu0 %v2765_v3  ;;  %2564 = vmatprep.mubr.msk.f32.mxu1 %vm2766_vm1, %v2765_v3 }
 0x556   : > { %2560 = vmatmul.mubr.msk.f32.vlgmr.msra.gmra.mxu0 %vm515_vm3, %v1265_v18 }
 0x557   : > { %2569 = vmatprep.mubr.msk.f32.mxu0 %vm2766_vm1, %v2765_v3 }
 0x60e   : > { %v2984_v19 = vpop.f32.mrf.mxu1 }
 0x610   : > { %v2546_v20 = vpop.f32.mrf.mxu1 }
 0x612   : > { %v2986_v21 = vpop.f32.mrf.mxu0  ;;  %v1260_v22 = vpop.f32.mrf.mxu1 }
 0x613   : > { %v1342_v23 = vsel %vm515_vm3, %v1260_v22, -inf }
 0x614   : > { %1343 = vmax.xlane.f32.xlu0 %v1342_v23  ;;  %v2551_v24 = vpop.f32.mrf.mxu0  ;;  %v2556_v25 = vpop.f32.mrf.mxu1  ;;  %v2672_v23 = vld [vmem:[%s2856_s19] sm:$0xff]  }
 0x616   : > { %v1338_v26 = vpop.f32.mrf.mxu0 }
 0x617   : > { %v1345_v27 = vsel %vm515_vm3, %v1338_v26, -inf }
 0x618   : > { %1346 = vmax.xlane.f32.xlu1 %v1345_v27  ;;  %v2561_v28 = vpop.f32.mrf.mxu0 }
 0x629   : > { %1364 = vrot.lane.b32.xlu1 %v2902_v8, %s2774_s14 }
 0x62d   : > { %1529 = vrot.lane.b32.xlu1 %v2902_v8, %s2775_s15 }
 0x631   : > { %1607 = vrot.lane.b32.xlu1 %v2905_v10, %s2775_s15 }
 0x635   : > { %1605 = vrot.lane.b32.xlu1 %v2919_v15, %s2776_s12 }
 0x69d   : > { %v1344_v29 = vpop.xlane.xlu0 %1343 }
 0x69e   : > { %v1348_v30 = vsub.f32 %v1260_v22, %v1344_v29  ;;  %v2671_v22 = vld [vmem:[%s2856_s19 + $0x8] sm:$0xff]  }
 0x6a0   : > { %v1350_v31 = vmul.f32 1.442695, %v1348_v30 }
 0x6a1   : > { %v1347_v32 = vpop.xlane.xlu1 %1346 }
 0x6a2   : > { %2699 = vpow2.f32 %v1350_v31  ;;  %v1349_v33 = vsub.f32 %v1338_v26, %v1347_v32 }
 0x6a4   : > { %v1352_v34 = vmul.f32 1.442695, %v1349_v33  ;;  %v1871_v33 = vlaneseq }
 0x6a5   : > { %v1365_v35 = vpop.permute.xlu1 %1364 }
 0x6a6   : > { %2701 = vpow2.f32 %v1352_v34  ;;  %2563 = vmatpush3.msra.mxu1 %v1365_v35  ;;  %v3043_v34 = vshrl.u32 %v1871_v33, 7 }
 0x6a7   : > { %2572 = vmatprep.subr.mxu1 %v2765_v3 }
 0x6a8   : > { %v1873_v35 = vsub.s32 0, %v3043_v34 }
 0x6a9   : > { %v1530_v42 = vpop.permute.xlu1 %1529 }
 0x6ad   : > { %v1608_v46 = vpop.permute.xlu1 %1607 }
 0x6af   : > { %v2700_v36 = vpop.eup %2699 }
 0x6b0   : > { %v1354_v37 = vsel %vm515_vm3, %v2700_v36, 0.0 }
 0x6b1   : > { %1355 = vadd.xlane.f32.xlu0 %v1354_v37  ;;  %v1606_v48 = vpop.permute.xlu1 %1605 }
 0x6b3   : > { %v2702_v38 = vpop.eup %2701 }
 0x6b4   : > { %v1357_v39 = vsel %vm515_vm3, %v2702_v38, 0.0 }
 0x6b5   : > { %1358 = vadd.xlane.f32.xlu0 %v1357_v39 }
 0x6cb   : > { %1440 = vrot.lane.b32.xlu0 %v2905_v10, %s2774_s14 }
 0x6cf   : > { %1527 = vrot.lane.b32.xlu0 %v2910_v13, %s2776_s12 }
 0x73a   : > { %v1356_v15 = vpop.xlane.xlu0 %1355 }
 0x73b   : > { %2703 = vrcp.f32 %v1356_v15 }
 0x73e   : > { %v1359_v40 = vpop.xlane.xlu0 %1358 }
 0x73f   : > { %2705 = vrcp.f32 %v1359_v40 }
 0x742   : > { %v1441_v41 = vpop.permute.xlu0 %1440 }
 0x743   : > { %2568 = vmatpush3.msra.mxu0 %v1441_v41 }
 0x744   : > { %2577 = vmatprep.subr.mxu0 %v2765_v3 }
 0x746   : > { %v1528_v47 = vpop.permute.xlu0 %1527 }
 0x748   : > { %v2704_v43 = vpop.eup %2703 }
 0x749   : > { %v1362_v44 = vmul.f32 %v2704_v43, %v2700_v36  ;;  %v3047_v36 = vld [vmem:[%s2876_s17] sm:$0xff] }
 0x74a   : > { %v1874_v37 = vrot.slane %v3047_v36, %v1873_v35  ;;  %v2040_v35 = vsub.s32 3, %v3043_v34 }
 0x74b   : > { %2565 = vmatmul.mubr.msk.f32.vlgmr.msra.gmra.mxu1 %vm515_vm3, %v1362_v44 }
 0x74c   : > { %v2706_v45 = vpop.eup %2705  ;;  %2573 = vmatpush3.xpose.msk.msra.mxu1 %vm515_vm3, %v1530_v42  ;;  %2574 = vmatprep.mubr.msk.f32.mxu1 %vm2766_vm1, %v2765_v3 }
 0x74d   : > { %v1363_v13 = vmul.f32 %v2706_v45, %v2702_v38  ;;  %2582 = vmatprep.subr.mxu1 %v2765_v3 }
 0x74f   : > { %2570 = vmatmul.mubr.msk.f32.vlgmr.msra.gmra.mxu0 %vm515_vm3, %v1363_v13  ;;  %2575 = vmatmul.mubr.msk.f32.vlgmr.msra.gmra.mxu1 %vm515_vm3, %v1528_v47 }
 0x750   : > { %2578 = vmatpush3.xpose.msk.msra.mxu0 %vm515_vm3, %v1608_v46  ;;  %2579 = vmatprep.mubr.msk.f32.mxu0 %vm2766_vm1, %v2765_v3 }
 0x751   : > { %2587 = vmatprep.subr.mxu0 %v2765_v3  ;;  %2584 = vmatprep.mubr.msk.f32.mxu1 %vm2766_vm1, %v2765_v3 }
 0x753   : > { %2580 = vmatmul.mubr.msk.f32.vlgmr.msra.gmra.mxu0 %vm515_vm3, %v1606_v48 }
 0x754   : > { %2589 = vmatprep.mubr.msk.f32.mxu0 %vm2766_vm1, %v2765_v3 }
 0x80b   : > { %v1436_v49 = vpop.f32.mrf.mxu1 }
 0x80d   : > { %v2566_v50 = vpop.f32.mrf.mxu1 }
 0x80f   : > { %v1512_v51 = vpop.f32.mrf.mxu0  ;;  %v1601_v52 = vpop.f32.mrf.mxu1 }
 0x810   : > { %v1683_v53 = vsel %vm515_vm3, %v1601_v52, -inf }
 0x811   : > { %1684 = vmax.xlane.f32.xlu0 %v1683_v53  ;;  %v2571_v54 = vpop.f32.mrf.mxu0  ;;  %v2576_v55 = vpop.f32.mrf.mxu1 }
 0x812   : > { %v2673_v54 = vld [vmem:[%s2861_s22 + $0x8] sm:$0xff]   ;;  %v2674_v55 = vld [vmem:[%s2861_s22] sm:$0xff]  }
 0x813   : > { %v1679_v56 = vpop.f32.mrf.mxu0 }
 0x814   : > { %v1686_v57 = vsel %vm515_vm3, %v1679_v56, -inf }
 0x815   : > { %1687 = vmax.xlane.f32.xlu1 %v1686_v57  ;;  %v2581_v58 = vpop.f32.mrf.mxu0  ;;  %v2676_v57 = vld [vmem:[%s2866_s25 + $0x30] sm:$0xff]  }
 0x816   : > { %v2677_v58 = vld [vmem:[%s2866_s25 + $0x28] sm:$0xff]  }
 0x826   : > { %1705 = vrot.lane.b32.xlu1 %v2902_v8, %s2777_s18 }
 0x82a   : > { %1177 = vrot.lane.b32.xlu1 %v2984_v19, %s2778_s13 }
 0x82e   : > { %1179 = vrot.lane.b32.xlu1 %v2986_v21, %s2778_s13 }
 0x832   : > { %1520 = vrot.lane.b32.xlu1 %v1512_v51, %s2779_s20 }
 0x89a   : > { %v1685_v59 = vpop.xlane.xlu0 %1684 }
 0x89b   : > { %v1689_v60 = vsub.f32 %v1601_v52, %v1685_v59  ;;  %v2678_v59 = vld [vmem:[%s2866_s25 + $0x20] sm:$0xff]  }
 0x89d   : > { %v1691_v61 = vmul.f32 1.442695, %v1689_v60  ;;  %v2679_v60 = vld [vmem:[%s2866_s25 + $0x18] sm:$0xff]  }
 0x89e   : > { %v1688_v62 = vpop.xlane.xlu1 %1687 }
 0x89f   : > { %2707 = vpow2.f32 %v1691_v61  ;;  %v1690_v63 = vsub.f32 %v1679_v56, %v1688_v62  ;;  %v2675_v56 = vld [vmem:[%s2866_s25 + $0x38] sm:$0xff]  }
 0x8a1   : > { %v1693_v0 = vmul.f32 1.442695, %v1690_v63 }
 0x8a2   : > { %v1706_v1 = vpop.permute.xlu1 %1705 }
 0x8a3   : > { %2709 = vpow2.f32 %v1693_v0  ;;  %2583 = vmatpush3.msra.mxu1 %v1706_v1 }
 0x8a4   : > { %2608 = vmatprep.subr.bf16.mxu1 %v2765_v3 }
 0x8a6   : > { %v1178_v8 = vpop.permute.xlu1 %1177 }
 0x8a7   : > { %1184 = vst.msk [vmem:[#allocation3] sm:$0xff] %vm1183_vm4, %v1178_v8 }
 0x8aa   : > { %v1180_v2 = vpop.permute.xlu1 %1179 }
 0x8ab   : > { %1185 = vst.msk [vmem:[#allocation3 + $0x8] sm:$0xff] %vm1183_vm4, %v1180_v2  ;;  %v1962_v2 = vsub.s32 1, %v3043_v34 }
 0x8ac   : > { %v2708_v4 = vpop.eup %2707 }
 0x8ad   : > { %v1695_v7 = vsel %vm515_vm3, %v2708_v4, 0.0 }
 0x8ae   : > { %1696 = vadd.xlane.f32.xlu0 %v1695_v7  ;;  %v1521_v9 = vpop.permute.xlu1 %1520 }
 0x8af   : > { %1526 = vst.msk [vmem:[#allocation3 + $0x8] sm:$0xff] %vm1524_vm5, %v1521_v9  ;;  %v1963_v9 = vrot.slane %v3047_v36, %v1962_v2 }
 0x8b0   : > { %v2710_v11 = vpop.eup %2709 }
 0x8b1   : > { %v1698_v12 = vsel %vm515_vm3, %v2710_v11, 0.0 }
 0x8b2   : > { %1699 = vadd.xlane.f32.xlu0 %v1698_v12 }
 0x8c8   : > { %1781 = vrot.lane.b32.xlu0 %v2905_v10, %s2777_s18 }
 0x8cc   : > { %1518 = vrot.lane.b32.xlu0 %v1436_v49, %s2779_s20 }
 0x937   : > { %v1697_v14 = vpop.xlane.xlu0 %1696 }
 0x938   : > { %2711 = vrcp.f32 %v1697_v14 }
 0x93b   : > { %v1700_v16 = vpop.xlane.xlu0 %1699 }
 0x93c   : > { %2713 = vrcp.f32 %v1700_v16 }
 0x93f   : > { %v1782_v17 = vpop.permute.xlu0 %1781 }
 0x940   : > { %2588 = vmatpush3.msra.mxu0 %v1782_v17 }
 0x941   : > { %2592 = vmatprep.subr.bf16.mxu0 %v2765_v3 }
 0x943   : > { %v1519_v18 = vpop.permute.xlu0 %1518 }
 0x944   : > { %1525 = vst.msk [vmem:[#allocation3] sm:$0xff] %vm1524_vm5, %v1519_v18 }
 0x945   : > { %v2712_v19 = vpop.eup %2711 }
 0x946   : > { %v1703_v20 = vmul.f32 %v2712_v19, %v2708_v4 }
 0x948   : > { %2585 = vmatmul.mubr.msk.f32.vlgmr.msra.gmra.mxu1 %vm515_vm3, %v1703_v20 }
 0x949   : > { %v2714_v21 = vpop.eup %2713  ;;  %2624 = vmatprep.mubr.msk.bf16.mxu1 %vm2766_vm1, %v2765_v3  ;;  %2609 = vmatpush3.bf16.msra.mxu1 %v2675_v56 }
 0x94a   : > { %v1704_v10 = vmul.f32 %v2714_v21, %v2710_v11  ;;  %2610 = vmatprep.subr.bf16.mxu1 %v2765_v3  ;;  %v1968_v11 = vsub.s32 2, %v3043_v34 }
 0x94c   : > { %2590 = vmatmul.mubr.msk.f32.vlgmr.msra.gmra.mxu0 %vm515_vm3, %v1704_v10  ;;  %v1969_v17 = vrot.slane %v3047_v36, %v1968_v11  ;;  %v2680_v10 = vld [vmem:[%s2866_s25 + $0x10] sm:$0xff]  }
 0x94d   : > { %2596 = vmatprep.mubr.msk.bf16.mxu0 %vm2766_vm1, %v2765_v3  ;;  %2593 = vmatpush3.bf16.msra.mxu0 %v2671_v22  ;;  %v2681_v22 = vld [vmem:[%s2866_s25 + $0x8] sm:$0xff]  }
 0x94e   : > { %2594 = vmatprep.subr.bf16.mxu0 %v2765_v3  ;;  %2611 = vmatpush3.bf16.msra.mxu1 %v2676_v57 }
 0x94f   : > { %2612 = vmatprep.subr.bf16.mxu1 %v2765_v3 }
 0x951   : > { %2595 = vmatpush3.bf16.msra.mxu0 %v2672_v23  ;;  %v2682_v23 = vld [vmem:[%s2866_s25] sm:$0xff]  }
 0x952   : > { %2600 = vmatprep.subr.bf16.mxu0 %v2765_v3  ;;  %2613 = vmatpush3.bf16.msra.mxu1 %v2677_v58 }
 0x953   : > { %2614 = vmatprep.subr.bf16.mxu1 %v2765_v3 }
 0x956   : > { %2615 = vmatpush3.bf16.msra.mxu1 %v2678_v59  ;;  %v2161_v59 = vsub.s32 4, %v3043_v34 }
 0x957   : > { %2616 = vmatprep.subr.bf16.mxu1 %v2765_v3 }
 0x95a   : > { %2617 = vmatpush3.bf16.msra.mxu1 %v2679_v60  ;;  %v2167_v60 = vsub.s32 5, %v3043_v34 }
 0x95b   : > { %2618 = vmatprep.subr.bf16.mxu1 %v2765_v3 }
 0x95e   : > { %2619 = vmatpush3.bf16.msra.mxu1 %v2680_v10 }
 0x95f   : > { %2620 = vmatprep.subr.bf16.mxu1 %v2765_v3 }
 0x962   : > { %2621 = vmatpush3.bf16.msra.mxu1 %v2681_v22 }
 0x963   : > { %2622 = vmatprep.subr.bf16.mxu1 %v2765_v3 }
 0x966   : > { %2623 = vmatpush3.bf16.msra.mxu1 %v2682_v23 }
 0xa08   : > { %v1777_v24 = vpop.f32.mrf.mxu1 }
 0xa09   : > { %1859 = vrot.lane.b32.xlu0 %v1777_v24, %s2780_s16  ;;  %v2425_v24 = vld [vmem:[%s409_s29] ss:$0 sm:$0xff] }
 0xa0a   : > { %v2586_v25 = vpop.f32.mrf.mxu1 }
 0xa0c   : > { %v1853_v26 = vpop.f32.mrf.mxu0 }
 0xa0d   : > { %1861 = vrot.lane.b32.xlu1 %v1853_v26, %s2780_s16 }
 0xa0e   : > { %v2591_v27 = vpop.f32.mrf.mxu0 }
 0xa7b   : > { %v1860_v28 = vpop.permute.xlu0 %1859 }
 0xa7c   : > { %1866 = vst.msk [vmem:[#allocation3] sm:$0xff] %vm1865_vm6, %v1860_v28 }
 0xa7f   : > { %v1862_v29 = vpop.permute.xlu1 %1861 }
 0xa80   : > { %1867 = vst.msk [vmem:[#allocation3 + $0x8] sm:$0xff] %vm1865_vm6, %v1862_v29 }
 0xa83   : > { %v1868_v30 = vld [vmem:[#allocation3] sm:$0xff] }
 0xa87   : > { %v1869_v31 = vld [vmem:[#allocation3 + $0x8] sm:$0xff] }
 0xa88   : > { %v1870_v32 = vpack.c.bf16 %v1869_v31, %v1868_v30 }
 0xa8a   : > { %2597 = vmatmul.mubr.msk.bf16.vlgmr.msra.gmra.mxu0 %vm465_vm2, %v1870_v32 }
 0xa8b   : > { %2604 = vmatprep.mubr.msk.bf16.mxu0 %vm2766_vm1, %v2765_v3  ;;  %2601 = vmatpush3.bf16.msra.mxu0 %v2673_v54 }
 0xa8c   : > { %2602 = vmatprep.subr.bf16.mxu0 %v2765_v3  ;;  %v2041_v3 = vrot.slane %v3047_v36, %v2040_v35 }
 0xa8f   : > { %2603 = vmatpush3.bf16.msra.mxu0 %v2674_v55 }
 0xb4a   : > { %v1924_v38 = vpop.f32.mrf.mxu0 }
 0xb4b   : > { %v1925_v39 = vadd.f32 %v1924_v38, %v1874_v37 }
 0xb4c   : > { %v2598_v15 = vpop.f32.mrf.mxu0 }
 0xb4d   : > { %v1931_v40 = vadd.f32 %v1925_v39, %v2889_v5 }
 0xb4e   : > { %v1927_v41 = vpop.f32.mrf.mxu0 }
 0xb4f   : > { %v1928_v42 = vadd.f32 %v1927_v41, %v1874_v37  ;;  %v1933_v43 = vsel %vm465_vm2, %v1931_v40, 0.0 }
 0xb50   : > { %1934 = vadd.xlane.f32.xlu0 %v1933_v43  ;;  %v2599_v44 = vpop.f32.mrf.mxu0 }
 0xb51   : > { %v1932_v45 = vadd.f32 %v1928_v42, %v2891_v6 }
 0xb53   : > { %v1936_v46 = vsel %vm465_vm2, %v1932_v45, 0.0 }
 0xb54   : > { %1937 = vadd.xlane.f32.xlu1 %v1936_v46 }
 0xbd9   : > { %v1935_v13 = vpop.xlane.xlu0 %1934 }
 0xbda   : > { %v1940_v47 = vmul.f32 0.03125, %v1935_v13 }
 0xbdc   : > { %v1942_v48 = vsub.f32 %v1931_v40, %v1940_v47 }
 0xbdd   : > { %v1938_v49 = vpop.xlane.xlu1 %1937 }
 0xbde   : > { %v1941_v5 = vmul.f32 0.03125, %v1938_v49  ;;  %v1944_v50 = vmul.f32 %v1942_v48, %v1942_v48 }
 0xbe0   : > { %v1943_v51 = vsub.f32 %v1932_v45, %v1941_v5  ;;  %v1946_v52 = vsel %vm465_vm2, %v1944_v50, 0.0 }
 0xbe1   : > { %1947 = vadd.xlane.f32.xlu0 %v1946_v52 }
 0xbe2   : > { %v1945_v53 = vmul.f32 %v1943_v51, %v1943_v51 }
 0xbe4   : > { %v1949_v6 = vsel %vm465_vm2, %v1945_v53, 0.0 }
 0xbe5   : > { %1950 = vadd.xlane.f32.xlu0 %v1949_v6 }
 0xc6a   : > { %v1948_v61 = vpop.xlane.xlu0 %1947 }
 0xc6b   : > { %v1952_v62 = vmul.f32 0.03125, %v1948_v61  ;;  %v2162_v61 = vrot.slane %v3047_v36, %v2161_v59 }
 0xc6d   : > { %v1954_v63 = vadd.f32 1e-05, %v1952_v62 }
 0xc6e   : > { %v1951_v0 = vpop.xlane.xlu0 %1950 }
 0xc6f   : > { %2715 = vrsqrt.f32 %v1954_v63  ;;  %v1953_v1 = vmul.f32 0.03125, %v1951_v0  ;;  %v2168_v63 = vrot.slane %v3047_v36, %v2167_v60 }
 0xc71   : > { %v1955_v8 = vadd.f32 1e-05, %v1953_v1 }
 0xc73   : > { %2717 = vrsqrt.f32 %v1955_v8 }
 0xc7c   : > { %v2716_v4 = vpop.eup %2715 }
 0xc7d   : > { %v1958_v7 = vmul.f32 %v2716_v4, %v1942_v48 }
 0xc7f   : > { %v1964_v16 = vmul.f32 %v1963_v9, %v1958_v7 }
 0xc80   : > { %v2718_v12 = vpop.eup %2717 }
 0xc81   : > { %v1959_v14 = vmul.f32 %v2718_v12, %v1943_v51  ;;  %v1970_v19 = vadd.f32 %v1969_v17, %v1964_v16 }
 0xc83   : > { %v1965_v18 = vmul.f32 %v1963_v9, %v1959_v14 }
 0xc85   : > { %v1971_v20 = vadd.f32 %v1969_v17, %v1965_v18 }
 0xc87   : > { %v1972_v21 = vpack.c.bf16 %v1971_v20, %v1970_v19 }
 0xc89   : > { %2605 = vmatmul.mubr.msk.bf16.vlgmr.msra.gmra.mxu0 %vm465_vm2, %v1972_v21 }
 0xd49   : > { %v2028_v25 = vpop.f32.mrf.mxu0 }
 0xd4a   : > { %v2029_v27 = vadd.f32 %v2425_v24, %v2028_v25 }
 0xd4b   : > { %v2606_v26 = vpop.f32.mrf.mxu0 }
 0xd4c   : > { %v2035_v31 = vmax.f32 %v2029_v27, 0.0 }
 0xd4d   : > { %v2031_v28 = vpop.f32.mrf.mxu0 }
 0xd4e   : > { %v2032_v29 = vadd.f32 %v2425_v24, %v2031_v28 }
 0xd4f   : > { %v2607_v30 = vpop.f32.mrf.mxu0 }
 0xd50   : > { %v2036_v32 = vmax.f32 %v2032_v29, 0.0 }
 0xd52   : > { %v2037_v33 = vpack.c.bf16 %v2036_v32, %v2035_v31 }
 0xd54   : > { %2625 = vmatmul.mubr.bf16.vlgmr.msra.gmra.mxu1 %v2037_v33 }
 0xe14   : > { %v2124_v37 = vpop.f32.mrf.mxu1 }
 0xe15   : > { %v2125_v38 = vadd.f32 %v2124_v37, %v2041_v3 }
 0xe16   : > { %v2626_v39 = vpop.f32.mrf.mxu1 }
 0xe17   : > { %v2131_v15 = vadd.f32 %v2125_v38, %v1970_v19 }
 0xe18   : > { %v2127_v40 = vpop.f32.mrf.mxu1 }
 0xe19   : > { %v2128_v41 = vadd.f32 %v2127_v40, %v2041_v3  ;;  %v2133_v42 = vsel %vm465_vm2, %v2131_v15, 0.0 }
 0xe1a   : > { %2134 = vadd.xlane.f32.xlu1 %v2133_v42  ;;  %v2627_v43 = vpop.f32.mrf.mxu1 }
 0xe1b   : > { %v2132_v44 = vadd.f32 %v2128_v41, %v1971_v20 }
 0xe1d   : > { %v2136_v45 = vsel %vm465_vm2, %v2132_v44, 0.0 }
 0xe1e   : > { %2137 = vadd.xlane.f32.xlu0 %v2136_v45 }
 0xea3   : > { %v2135_v46 = vpop.xlane.xlu1 %2134 }
 0xea4   : > { %v2139_v13 = vmul.f32 0.03125, %v2135_v46 }
 0xea6   : > { %v2141_v47 = vsub.f32 %v2131_v15, %v2139_v13 }
 0xea7   : > { %v2138_v48 = vpop.xlane.xlu0 %2137 }
 0xea8   : > { %v2140_v49 = vmul.f32 0.03125, %v2138_v48  ;;  %v2143_v5 = vmul.f32 %v2141_v47, %v2141_v47 }
 0xeaa   : > { %v2142_v50 = vsub.f32 %v2132_v44, %v2140_v49  ;;  %v2145_v51 = vsel %vm465_vm2, %v2143_v5, 0.0 }
 0xeab   : > { %2146 = vadd.xlane.f32.xlu1 %v2145_v51 }
 0xeac   : > { %v2144_v52 = vmul.f32 %v2142_v50, %v2142_v50 }
 0xeae   : > { %v2148_v53 = vsel %vm465_vm2, %v2144_v52, 0.0 }
 0xeaf   : > { %2149 = vadd.xlane.f32.xlu0 %v2148_v53 }
 0xf34   : > { %v2147_v6 = vpop.xlane.xlu1 %2146 }
 0xf35   : > { %v2151_v54 = vmul.f32 0.03125, %v2147_v6 }
 0xf37   : > { %v2153_v55 = vadd.f32 1e-05, %v2151_v54 }
 0xf38   : > { %v2150_v56 = vpop.xlane.xlu0 %2149 }
 0xf39   : > { %2719 = vrsqrt.f32 %v2153_v55  ;;  %v2152_v57 = vmul.f32 0.03125, %v2150_v56 }
 0xf3b   : > { %v2154_v58 = vadd.f32 1e-05, %v2152_v57 }
 0xf3d   : > { %2721 = vrsqrt.f32 %v2154_v58 }
 0xf46   : > { %v2720_v62 = vpop.eup %2719 }
 0xf47   : > { %v2157_v0 = vmul.f32 %v2720_v62, %v2141_v47 }
 0xf49   : > { %v2163_v1 = vmul.f32 %v2162_v61, %v2157_v0 }
 0xf4a   : > { %v2722_v8 = vpop.eup %2721 }
 0xf4b   : > { %v2169_v2 = vadd.f32 %v2168_v63, %v2163_v1  ;;  %v2158_v4 = vmul.f32 %v2722_v8, %v2142_v50  ;;  %2174 = sbr.rel (%p2437_p5) target bundleno = 3922 (0xf52), region = 64 }
 0xf4d   : > { %v2164_v7 = vmul.f32 %v2162_v61, %v2158_v4 }
 0xf4f   : > { %v2170_v9 = vadd.f32 %v2168_v63, %v2164_v7 }
 0xf50   : > { %2175 = vst.msk [vmem:[#allocation2] sm:$0xff] %vm465_vm2, %v2169_v2 }
 0xf51   : > { %2176 = vst.msk [vmem:[#allocation2 + $0x8] sm:$0xff] %vm465_vm2, %v2170_v9 }
 0xf52 PF: > { %p2438_p6 = scmp.ne.s32.totalorder %s2840_s10, 1 }
 0xf54   : > { %2180 = sbr.rel (%p2438_p6) target bundleno = 4455 (0x1167), region = 68 }
 0xf59   : > { %v2723_v34 = vld [vmem:[%s3132_s7 + $0x8] sm:$0xff]   ;;  %v2781_v36 = vmov 0.0   ;;  %v2724_v11 = vld [vmem:[%s3132_s7] sm:$0xff]   ;;  %vm2782_vm7 = vmmov 0   ;;  %v2181_v12 = vsel %vm465_vm2, %v2169_v2, -inf  ;;  %v2188_v14 = vsel %vm465_vm2, %v2170_v9, -inf }
 0xf5a   : > { %2628 = vmatprep.subr.bf16.mxu0 %v2781_v36  ;;  %2632 = vmatprep.mubr.msk.bf16.mxu0 %vm2782_vm7, %v2781_v36  ;;  %v2182_v16 = vrot.slane %v2181_v12, 4  ;;  %v2189_v17 = vrot.slane %v2188_v14, 4  ;;  %vm2195_vm8 = vcmask 1040384   ;;  %v2439_v29 = vld [vmem:[%s3133_s8] ss:$0 sm:$0xff]  ;;  %vm2264_vm9 = vcmask 1041408  }
 0xf5b   : > { %2629 = vmatpush3.bf16.msra.mxu0 %v2723_v34 }
 0xf5c   : > { %2630 = vmatprep.subr.bf16.mxu0 %v2781_v36  ;;  %v2183_v18 = vmax.f32 %v2181_v12, %v2182_v16  ;;  %v2190_v19 = vmax.f32 %v2188_v14, %v2189_v17 }
 0xf5e   : > { %v2184_v20 = vrot.slane %v2183_v18, 2  ;;  %v2191_v21 = vrot.slane %v2190_v19, 2 }
 0xf5f   : > { %2631 = vmatpush3.bf16.msra.mxu0 %v2724_v11 }
 0xf60   : > { %v2185_v10 = vmax.f32 %v2183_v18, %v2184_v20  ;;  %v2192_v22 = vmax.f32 %v2190_v19, %v2191_v21 }
 0xf62   : > { %v2186_v23 = vrot.slane %v2185_v10, 1  ;;  %v2193_v24 = vrot.slane %v2192_v22, 1 }
 0xf64   : > { %v2187_v25 = vmax.f32 %v2185_v10, %v2186_v23  ;;  %v2194_v26 = vmax.f32 %v2192_v22, %v2193_v24 }
 0xf66   : > { %v2196_v27 = vsel %vm2195_vm8, %v2187_v25, %v2194_v26 }
 0xf67   : > { %v2201_v28 = vpack.c.bf16 %v2196_v27, %v2196_v27 }
 0xf69   : > { %2633 = vmatmul.mubr.msk.bf16.vlgmr.msra.gmra.mxu0 %vm465_vm2, %v2201_v28 }
0x1029   : > { %v2258_v30 = vpop.f32.mrf.mxu0 }
0x102a   : > { %v2259_v31 = vadd.f32 %v2439_v29, %v2258_v30 }
0x102b   : > { %v2634_v32 = vpop.f32.mrf.mxu0 }
0x102c   : > { %v2265_v33 = vsel %vm2264_vm9, %v2259_v31, -inf }
0x102d   : > { %2266 = vmax.xlane.f32.xlu0 %v2265_v33  ;;  %v2261_v35 = vpop.f32.mrf.mxu0 }
0x102f   : > { %v2635_v3 = vpop.f32.mrf.mxu0 }
0x10b6   : > { %v2267_v37 = vpop.xlane.xlu0 %2266 }
0x10b7   : > { %v2268_v38 = vsub.f32 %v2259_v31, %v2267_v37 }
0x10b9   : > { %v2269_v39 = vmul.f32 1.442695, %v2268_v38 }
0x10bb   : > { %2725 = vpow2.f32 %v2269_v39 }
0x10c8   : > { %v2726_v15 = vpop.eup %2725 }
0x10c9   : > { %v2271_v40 = vsel %vm2264_vm9, %v2726_v15, 0.0 }
0x10ca   : > { %2272 = vadd.xlane.f32.xlu0 %v2271_v40 }
0x1153   : > { %v2273_v41 = vpop.xlane.xlu0 %2272 }
0x1154   : > { %2727 = vlog2.f32 %v2273_v41 }
0x1161   : > { %v2728_v42 = vpop.eup %2727 }
0x1162   : > { %v2275_v43 = vmul.f32 0.6931472, %v2728_v42 }
0x1164   : > { %v2276_v44 = vsub.f32 %v2268_v38, %v2275_v43 }
0x1166   : > { %2277 = vst [vmem:[#allocation4] sm:$0x3] %v2276_v44 }
0x1167 PF: > { %p2640_p7 = scmp.eq.s32.totalorder %s2840_s10, 1  ;;  %s2783_s24 = smov [#allocation4]  }
0x1168   : > { %s2285_s26 = sshll.u32 %s2783_s24, 4  ;;  %s2286_s26 = int_to_ptr.vmem [resolvable:$true] %s2285_s26 }
0x1169   : > { %s2729_s27 = scalar_lea.vmem %s2286_s26, 32  ;;  %p2736_p11 = scmp.lt.s32.totalorder %s2286_s26, %s2286_s26 }
0x116a   : > { %p2730_p8 = scmp.ne.s32.totalorder %s2286_s26, %s2729_s27  ;;  %p2737_p12 = scmp.lt.s32.totalorder %s2729_s27, %s2729_s27 }
0x116c   : > { %p2731_p9 = pnand %p2730_p8, %p2640_p7  ;;  %p2738_p13 = por %p2737_p12, %p2736_p11 }
0x116e   : > { %p2732_p10 = pneg %p2731_p9 }
0x1170   : > { %p2739_p0 = pnand %p2738_p13, %p2732_p10 }
0x1172   : > { %2742 = shalt.err (!%p2739_p0)
}
0x1173   : > { %2637 = dma.vmem_to_hbm [thread:$0]  (%p2640_p7), %s2286_s26, 32, %s3134_s9, [#allocation5]  }
0x1174   : > { %2758 = dma.done.wait (%p2640_p7), [#allocation5], 32  }
0x1175   : > { %2760 = vsyncadd (%p2640_p7), [#allocation5], 4294967264 }
0x1176 PF: > { %s20_s30 = sadd.s32 1, %s2763_s30  }
0x1177   : > { %p17_p1 = scmp.ge.s32.totalorder %s20_s30, 4  }
0x1179   :  { %19 = sbr.rel (!%p17_p1) target bundleno = 1 (0x1), region = 110 }
0x117e   :  { %2298 = vsyncpa [#allocation5], 1 }
0x117f   :  { %2300 = vsyncpa [#allocation5 + $0x1], 1 }

</bundles_post_ra>
